<compile_context>
chip_gen: v5e
topology: v5e:2x2
jax: 0.10.0
libtpu: 0.0.40
codegen_flags: <defaults>
</compile_context>

<pallas_src>
import jax
import jax.numpy as jnp
from jax import lax
from jax.experimental import pallas as pl
from jax.experimental.pallas import tpu as pltpu


def se_block_kernel(xse_ref, w1_ref, b1_ref, w2_ref, x_hbm_ref, o_ref,
                    x_vmem, sem):
    # (1) Kick off the big activation copy immediately so the serial gate
    #     chain below hides under it.
    cp = pltpu.make_async_copy(x_hbm_ref, x_vmem, sem)
    cp.start()

    # (2) Gate chain (tiny, f32): [1,24] . [24,576] -> [1,576] + bias.
    #     w1 arrives pre-transposed ([24,576]) -> plain (1,0) contraction,
    #     no in-kernel operand relayout on the critical chain.
    z = lax.dot_general(
        xse_ref[...].astype(jnp.float32),
        w1_ref[...].astype(jnp.float32),
        dimension_numbers=(((1,), (0,)), ((), ())),
        preferred_element_type=jnp.float32,
    ) + b1_ref[...].astype(jnp.float32)                          # [1, 576]

    # Exact sigmoid (hidden under the DMA, so approx reciprocal buys nothing).
    gate = 1.0 / (1.0 + jnp.exp(-z))                             # [1, 576] f32

    # (3) Fold the per-channel gate into the 2nd conv's weights instead of
    #     scaling the full [576,HW] activation slab.  Multiply in w2's dtype
    #     (bf16 on v6e/v7x VPUs; Mosaic widens internally on v5e).
    w2s = (w2_ref[...] * gate.astype(w2_ref.dtype)).astype(x_vmem.dtype)  # [136,576]

    # (4) Wait for the activation slab, then the dominant MXU matmul:
    #     [136,576] . [576,196] -> [136,196], f32 accumulation, store in the
    #     activation dtype (halves writeback when bf16).
    cp.wait()
    o_ref[...] = lax.dot_general(
        w2s,
        x_vmem[...],
        dimension_numbers=(((1,), (0,)), ((), ())),
        preferred_element_type=jnp.float32,
    ).astype(o_ref.dtype)


def se_block(x206, x203, w1_oihw, b1, w2_oihw):
    """SE tail of module M.

    x206: [1, C_sq, 1, 1] squeezed descriptor; x203: [1, C_mid, H, W] feature
    map.  Weights are PyTorch OIHW 1x1 convs.  Dtypes are preserved: pass
    x203 / w2 as bf16 on every generation (v5e/v6e/v7x) to halve the dominant
    HBM DMA; the gate math stays f32 inside the kernel and the MXU always
    accumulates in f32.  Output dtype follows x203's dtype.
    """
    N, C_sq = x206.shape[0], x206.shape[1]
    _, C_mid, H, W = x203.shape
    C_out = w2_oihw.shape[0]
    assert N == 1, "kernel handles a single image (as in the reference module)"
    assert w1_oihw.shape[:2] == (C_mid, C_sq)
    assert w2_oihw.shape[1] == C_mid

    # Pure reshapes (free views) -- no activation transposes, no dtype casts.
    xse = x206.reshape(N, C_sq)                        # [1, 24]
    x2d = x203.reshape(C_mid, H * W)                   # [576, 196]
    w1t = jnp.transpose(w1_oihw.reshape(C_mid, C_sq))  # [24, 576] (tiny, const-foldable)
    b1r = b1.reshape(1, C_mid)                         # [1, 576]
    w2 = w2_oihw.reshape(C_out, C_mid)                 # [136, 576]

    out_dtype = x2d.dtype

    flops = 2 * C_out * C_mid * H * W + 2 * C_mid * C_sq + C_out * C_mid
    bytes_accessed = (
        x2d.size * x2d.dtype.itemsize
        + w2.size * w2.dtype.itemsize
        + w1t.size * w1t.dtype.itemsize
        + b1r.size * b1r.dtype.itemsize
        + xse.size * xse.dtype.itemsize
        + C_out * H * W * jnp.dtype(out_dtype).itemsize)

    out2d = pl.pallas_call(
        se_block_kernel,
        out_shape=jax.ShapeDtypeStruct((C_out, H * W), out_dtype),
        in_specs=[
            pl.BlockSpec(memory_space=pltpu.MemorySpace.VMEM),   # xse
            pl.BlockSpec(memory_space=pltpu.MemorySpace.VMEM),   # w1 (pre-T)
            pl.BlockSpec(memory_space=pltpu.MemorySpace.VMEM),   # b1
            pl.BlockSpec(memory_space=pltpu.MemorySpace.VMEM),   # w2
            pl.BlockSpec(memory_space=pl.ANY),                   # x2d: manual DMA
        ],
        out_specs=pl.BlockSpec(memory_space=pltpu.MemorySpace.VMEM),
        scratch_shapes=[
            pltpu.VMEM((C_mid, H * W), x2d.dtype),               # x2d landing buffer
            pltpu.SemaphoreType.DMA(()),
        ],
        cost_estimate=pl.CostEstimate(
            flops=flops, transcendentals=C_mid, bytes_accessed=bytes_accessed),
    )(xse, w1t, b1r, w2, x2d)

    # [136, 196] -> [1, 136, 14, 14]: another pure reshape (no transpose).
    return out2d.reshape(N, C_out, H, W)


def reference(x206, x203, w1_oihw, b1, w2_oihw):
    """Plain-JAX reference matching PyTorch 1x1-conv semantics (f32 math)."""
    C_mid, C_sq = w1_oihw.shape[:2]
    C_out = w2_oihw.shape[0]
    z = jnp.einsum(
        "oi,ni->no",
        w1_oihw.reshape(C_mid, C_sq).astype(jnp.float32),
        x206.reshape(-1, C_sq).astype(jnp.float32),
    ) + b1.astype(jnp.float32)
    gate = jax.nn.sigmoid(z).reshape(1, C_mid, 1, 1)
    y = gate * x203.astype(jnp.float32)
    return jnp.einsum(
        "oc,nchw->nohw", w2_oihw.reshape(C_out, C_mid).astype(jnp.float32), y)


if __name__ == "__main__":
    key = jax.random.PRNGKey(0)
    k1, k2, k3, k4, k5 = jax.random.split(key, 5)

    # Shapes implied by the module's forward.
    x203 = jax.random.normal(k1, (1, 576, 14, 14), dtype=jnp.float32)
    x206 = jax.random.normal(k2, (1, 24, 1, 1), dtype=jnp.float32)

    # Deterministic synthetic parameters (OIHW like PyTorch).
    w1 = jax.random.normal(k3, (576, 24, 1, 1), dtype=jnp.float32) * 0.1
    b1 = jax.random.normal(k4, (576,), dtype=jnp.float32) * 0.1
    w2 = jax.random.normal(k5, (136, 576, 1, 1), dtype=jnp.float32) * 0.05

    # f32 path (bit-for-bit-ish parity with the PyTorch module).
    out = jax.block_until_ready(se_block(x206, x203, w1, b1, w2))
    ref = reference(x206, x203, w1, b1, w2)
    assert out.shape == (1, 136, 14, 14), out.shape
    assert out.dtype == jnp.float32, out.dtype
    assert jnp.allclose(out, ref, atol=1e-2, rtol=1e-2), \
        float(jnp.max(jnp.abs(out - ref)))

    # bf16 activation/weight path (recommended on ALL generations: halves the
    # dominant x2d + w2 HBM traffic and the output writeback).  Note: the gate
    # and the gated weights are quantized to bf16 before the MXU, a slightly
    # different rounding point than a f32 conv with bf16 inputs.
    x203_bf16 = x203.astype(jnp.bfloat16)
    w2_bf16 = w2.astype(jnp.bfloat16)
    out_bf16 = jax.block_until_ready(se_block(x206, x203_bf16, w1, b1, w2_bf16))
    assert out_bf16.dtype == jnp.bfloat16, out_bf16.dtype
    ref_bf16 = reference(x206, x203_bf16.astype(jnp.float32), w1, b1,
                         w2_bf16.astype(jnp.float32))
    assert jnp.allclose(out_bf16.astype(jnp.float32), ref_bf16,
                        atol=5e-2, rtol=5e-2), \
        float(jnp.max(jnp.abs(out_bf16.astype(jnp.float32) - ref_bf16)))

    print("KERNEL_OK")
</pallas_src>

<mosaic_0001>
module attributes {stable_mosaic.version = 11 : i64} {
  func.func @se_block_kernel(%arg0: memref<1x24xf32, #tpu.memory_space<vmem>>, %arg1: memref<24x576xf32, #tpu.memory_space<vmem>>, %arg2: memref<1x576xf32, #tpu.memory_space<vmem>>, %arg3: memref<136x576xf32, #tpu.memory_space<vmem>>, %arg4: memref<576x196xf32, #tpu.memory_space<any>>, %arg5: memref<136x196xf32, #tpu.memory_space<vmem>>, %arg6: memref<576x196xf32, #tpu.memory_space<vmem>>, %arg7: memref<!tpu.dma_semaphore, #tpu.memory_space<semaphore_mem>>) attributes {dimension_semantics = [], scalar_prefetch = 0 : i64, scratch_operands = 2 : i64, tpu.core_type = #tpu.core_type<tc>} {
    tpu.enqueue_dma source(%arg4 : memref<576x196xf32, #tpu.memory_space<any>>) target(%arg6 : memref<576x196xf32, #tpu.memory_space<vmem>>) target_semaphore(%arg7 : memref<!tpu.dma_semaphore, #tpu.memory_space<semaphore_mem>>)
    %c0 = arith.constant 0 : index
    %c0_0 = arith.constant 0 : index
    %0 = vector.load %arg0[%c0, %c0_0] : memref<1x24xf32, #tpu.memory_space<vmem>>, vector<1x24xf32>
    %c0_1 = arith.constant 0 : index
    %c0_2 = arith.constant 0 : index
    %1 = vector.load %arg1[%c0_1, %c0_2] : memref<24x576xf32, #tpu.memory_space<vmem>>, vector<24x576xf32>
    %cst = arith.constant dense<0.000000e+00> : vector<1x576xf32>
    %2 = tpu.matmul %0, %1, %cst {dimension_numbers = #tpu.dot_dimension_numbers<[1], [0], [0], [1], [0, 0, 1, 1], [], []>} : vector<1x24xf32>, vector<24x576xf32>, vector<1x576xf32> -> vector<1x576xf32>
    %c0_3 = arith.constant 0 : index
    %c0_4 = arith.constant 0 : index
    %3 = vector.load %arg2[%c0_3, %c0_4] : memref<1x576xf32, #tpu.memory_space<vmem>>, vector<1x576xf32>
    %4 = arith.addf %2, %3 : vector<1x576xf32>
    %cst_5 = arith.constant 0.000000e+00 : f32
    %5 = vector.broadcast %cst_5 : f32 to vector<1x576xf32>
    %6 = arith.subf %5, %4 : vector<1x576xf32>
    %7 = math.exp %6 : vector<1x576xf32>
    %cst_6 = arith.constant 1.000000e+00 : f32
    %8 = vector.broadcast %cst_6 : f32 to vector<1x576xf32>
    %9 = arith.addf %8, %7 : vector<1x576xf32>
    %cst_7 = arith.constant 1.000000e+00 : f32
    %10 = vector.broadcast %cst_7 : f32 to vector<1x576xf32>
    %11 = arith.divf %10, %9 : vector<1x576xf32>
    %c0_8 = arith.constant 0 : index
    %c0_9 = arith.constant 0 : index
    %12 = vector.load %arg3[%c0_8, %c0_9] : memref<136x576xf32, #tpu.memory_space<vmem>>, vector<136x576xf32>
    %13 = vector.broadcast %11 : vector<1x576xf32> to vector<136x576xf32>
    %14 = arith.mulf %12, %13 : vector<136x576xf32>
    tpu.wait_dma2 semaphore(%arg7 : memref<!tpu.dma_semaphore, #tpu.memory_space<semaphore_mem>>) src(%arg4 : memref<576x196xf32, #tpu.memory_space<any>>) dst(%arg6 : memref<576x196xf32, #tpu.memory_space<vmem>>)
    %c0_10 = arith.constant 0 : index
    %c0_11 = arith.constant 0 : index
    %15 = vector.load %arg6[%c0_10, %c0_11] : memref<576x196xf32, #tpu.memory_space<vmem>>, vector<576x196xf32>
    %cst_12 = arith.constant dense<0.000000e+00> : vector<136x196xf32>
    %16 = tpu.matmul %14, %15, %cst_12 {dimension_numbers = #tpu.dot_dimension_numbers<[1], [0], [0], [1], [0, 0, 1, 1], [], []>} : vector<136x576xf32>, vector<576x196xf32>, vector<136x196xf32> -> vector<136x196xf32>
    %c0_13 = arith.constant 0 : index
    %c0_14 = arith.constant 0 : index
    %17 = vector.load %arg5[%c0_13, %c0_14] : memref<136x196xf32, #tpu.memory_space<vmem>>, vector<136x196xf32>
    tpu.vector_store %arg5[%c0_13, %c0_14], %16 {strides = array<i32>} : memref<136x196xf32, #tpu.memory_space<vmem>>, vector<136x196xf32>,
    return
  }
}

</mosaic_0001>

<bundles_post_ra>
// kernel: tpu_custom_call.1
= control target key start
LH: loop header
LB: loop body
LE: loop exit
PB: predicated region body
PF: predicated region fallthrough
CT: control target
= control target key end

     0   :  { %10 = vsyncpa [#allocation5], 0  ;;  %s3638_s0 = inlined_call_operand.vmem [shape: f32[1,24], index: 0, kind: input, shape index: {}]   ;;  %s3639_s1 = inlined_call_operand.vmem [shape: f32[24,576], index: 1, kind: input, shape index: {}]   ;;  %s3640_s2 = inlined_call_operand.vmem [shape: f32[1,576], index: 2, kind: input, shape index: {}]   ;;  %s3641_s3 = inlined_call_operand.vmem [shape: f32[136,576], index: 3, kind: input, shape index: {}]   ;;  %s3642_s4 = inlined_call_operand.vmem [shape: f32[576,196], index: 4, kind: input, shape index: {}]   ;;  %s3643_s5 = inlined_call_operand.hbm [shape: f32[136,196], index: 5, kind: output, shape index: {}]  }
   0x1   :  { %v1827_v0 = vld [vmem:[%s3642_s4] sm:$0xff]  ;;  %v1832_v1 = vld [vmem:[%s3642_s4 + $0x8] sm:$0xff]  ;;  %v1837_v2 = vld [vmem:[%s3642_s4 + $0x10] sm:$0xff] }
   0x2   :  { %3719 = vst [vmem:[#allocation9_spill] sm:$0xff] %v1827_v0  ;;  %v1842_v3 = vld [vmem:[%s3642_s4 + $0x18] sm:$0xff]  ;;  %v1847_v4 = vld [vmem:[%s3642_s4 + $0x20] sm:$0xff]  ;;  %v1852_v5 = vld [vmem:[%s3642_s4 + $0x28] sm:$0xff] }
   0x3   :  { %3720 = vst [vmem:[#allocation10_spill] sm:$0xff] %v1832_v1  ;;  %v1857_v6 = vld [vmem:[%s3642_s4 + $0x30] sm:$0xff]  ;;  %v1862_v7 = vld [vmem:[%s3642_s4 + $0x38] sm:$0xff]  ;;  %v1867_v8 = vld [vmem:[%s3642_s4 + $0x40] sm:$0xff] }
   0x4   :  { %3721 = vst [vmem:[#allocation11_spill] sm:$0xff] %v1842_v3  ;;  %v1872_v9 = vld [vmem:[%s3642_s4 + $0x48] sm:$0xff]  ;;  %v1877_v10 = vld [vmem:[%s3642_s4 + $0x50] sm:$0xff]  ;;  %v1882_v11 = vld [vmem:[%s3642_s4 + $0x58] sm:$0xff] }
   0x5   :  { %3722 = vst [vmem:[#allocation12_spill] sm:$0xff] %v1852_v5  ;;  %v1887_v12 = vld [vmem:[%s3642_s4 + $0x60] sm:$0xff]  ;;  %v1892_v13 = vld [vmem:[%s3642_s4 + $0x68] sm:$0xff]  ;;  %v1897_v14 = vld [vmem:[%s3642_s4 + $0x70] sm:$0xff] }
   0x6   :  { %3723 = vst [vmem:[#allocation13_spill] sm:$0xff] %v1862_v7  ;;  %v1902_v15 = vld [vmem:[%s3642_s4 + $0x78] sm:$0xff]  ;;  %v1907_v16 = vld [vmem:[%s3642_s4 + $0x80] sm:$0xff]  ;;  %v1912_v17 = vld [vmem:[%s3642_s4 + $0x88] sm:$0xff] }
   0x7   :  { %3724 = vst [vmem:[#allocation14_spill] sm:$0xff] %v1872_v9  ;;  %v1917_v18 = vld [vmem:[%s3642_s4 + $0x90] sm:$0xff]  ;;  %v1922_v19 = vld [vmem:[%s3642_s4 + $0x98] sm:$0xff]  ;;  %v1927_v20 = vld [vmem:[%s3642_s4 + $0xa0] sm:$0xff] }
   0x8   :  { %3725 = vst [vmem:[#allocation15_spill] sm:$0xff] %v1882_v11  ;;  %v1932_v21 = vld [vmem:[%s3642_s4 + $0xa8] sm:$0xff]  ;;  %v1937_v22 = vld [vmem:[%s3642_s4 + $0xb0] sm:$0xff]  ;;  %v1942_v23 = vld [vmem:[%s3642_s4 + $0xb8] sm:$0xff] }
   0x9   :  { %3726 = vst [vmem:[#allocation16_spill] sm:$0xff] %v1892_v13  ;;  %v1947_v24 = vld [vmem:[%s3642_s4 + $0xc0] sm:$0xff]  ;;  %v1952_v25 = vld [vmem:[%s3642_s4 + $0xc8] sm:$0xff]  ;;  %v1957_v26 = vld [vmem:[%s3642_s4 + $0xd0] sm:$0xff] }
   0xa   :  { %3727 = vst [vmem:[#allocation17_spill] sm:$0xff] %v1902_v15  ;;  %v1962_v27 = vld [vmem:[%s3642_s4 + $0xd8] sm:$0xff]  ;;  %v1967_v28 = vld [vmem:[%s3642_s4 + $0xe0] sm:$0xff]  ;;  %v1972_v29 = vld [vmem:[%s3642_s4 + $0xe8] sm:$0xff] }
   0xb   :  { %3728 = vst [vmem:[#allocation18_spill] sm:$0xff] %v1912_v17  ;;  %v1977_v30 = vld [vmem:[%s3642_s4 + $0xf0] sm:$0xff]  ;;  %v1982_v31 = vld [vmem:[%s3642_s4 + $0xf8] sm:$0xff]  ;;  %v1987_v32 = vld [vmem:[%s3642_s4 + $0x100] sm:$0xff] }
   0xc   :  { %3729 = vst [vmem:[#allocation19_spill] sm:$0xff] %v1922_v19  ;;  %v1992_v33 = vld [vmem:[%s3642_s4 + $0x108] sm:$0xff]  ;;  %v1997_v34 = vld [vmem:[%s3642_s4 + $0x110] sm:$0xff]  ;;  %v2002_v35 = vld [vmem:[%s3642_s4 + $0x118] sm:$0xff] }
   0xd   :  { %3730 = vst [vmem:[#allocation20_spill] sm:$0xff] %v1932_v21  ;;  %v2007_v36 = vld [vmem:[%s3642_s4 + $0x120] sm:$0xff]  ;;  %v2012_v37 = vld [vmem:[%s3642_s4 + $0x128] sm:$0xff]  ;;  %v2017_v38 = vld [vmem:[%s3642_s4 + $0x130] sm:$0xff] }
   0xe   :  { %3731 = vst [vmem:[#allocation21_spill] sm:$0xff] %v1942_v23  ;;  %v2022_v39 = vld [vmem:[%s3642_s4 + $0x138] sm:$0xff]  ;;  %v2027_v40 = vld [vmem:[%s3642_s4 + $0x140] sm:$0xff]  ;;  %v2032_v41 = vld [vmem:[%s3642_s4 + $0x148] sm:$0xff] }
   0xf   :  { %3732 = vst [vmem:[#allocation22_spill] sm:$0xff] %v1952_v25  ;;  %v2037_v42 = vld [vmem:[%s3642_s4 + $0x150] sm:$0xff]  ;;  %v2042_v43 = vld [vmem:[%s3642_s4 + $0x158] sm:$0xff]  ;;  %v2047_v44 = vld [vmem:[%s3642_s4 + $0x160] sm:$0xff] }
  0x10   :  { %3733 = vst [vmem:[#allocation23_spill] sm:$0xff] %v1962_v27  ;;  %v2052_v45 = vld [vmem:[%s3642_s4 + $0x168] sm:$0xff]  ;;  %v2057_v46 = vld [vmem:[%s3642_s4 + $0x170] sm:$0xff]  ;;  %v2062_v47 = vld [vmem:[%s3642_s4 + $0x178] sm:$0xff] }
  0x11   :  { %3734 = vst [vmem:[#allocation24_spill] sm:$0xff] %v1972_v29  ;;  %v2067_v48 = vld [vmem:[%s3642_s4 + $0x180] sm:$0xff]  ;;  %v2072_v49 = vld [vmem:[%s3642_s4 + $0x188] sm:$0xff]  ;;  %v2077_v50 = vld [vmem:[%s3642_s4 + $0x190] sm:$0xff] }
  0x12   :  { %3735 = vst [vmem:[#allocation25_spill] sm:$0xff] %v1982_v31  ;;  %v2082_v51 = vld [vmem:[%s3642_s4 + $0x198] sm:$0xff]  ;;  %v2087_v52 = vld [vmem:[%s3642_s4 + $0x1a0] sm:$0xff]  ;;  %v2092_v53 = vld [vmem:[%s3642_s4 + $0x1a8] sm:$0xff] }
  0x13   :  { %3736 = vst [vmem:[#allocation26_spill] sm:$0xff] %v1987_v32  ;;  %v2097_v54 = vld [vmem:[%s3642_s4 + $0x1b0] sm:$0xff]  ;;  %v2102_v55 = vld [vmem:[%s3642_s4 + $0x1b8] sm:$0xff]  ;;  %v2107_v56 = vld [vmem:[%s3642_s4 + $0x1c0] sm:$0xff] }
  0x14   :  { %3737 = vst [vmem:[#allocation27_spill] sm:$0xff] %v1992_v33  ;;  %v2112_v57 = vld [vmem:[%s3642_s4 + $0x1c8] sm:$0xff]  ;;  %v2117_v58 = vld [vmem:[%s3642_s4 + $0x1d0] sm:$0xff]  ;;  %v2122_v59 = vld [vmem:[%s3642_s4 + $0x1d8] sm:$0xff] }
  0x15   :  { %3738 = vst [vmem:[#allocation28_spill] sm:$0xff] %v2002_v35  ;;  %v2127_v60 = vld [vmem:[%s3642_s4 + $0x1e0] sm:$0xff]  ;;  %v2132_v61 = vld [vmem:[%s3642_s4 + $0x1e8] sm:$0xff]  ;;  %v2137_v62 = vld [vmem:[%s3642_s4 + $0x1f0] sm:$0xff] }
  0x16   :  { %3739 = vst [vmem:[#allocation29_spill] sm:$0xff] %v2012_v37  ;;  %v2142_v63 = vld [vmem:[%s3642_s4 + $0x1f8] sm:$0xff]  ;;  %v2147_v33 = vld [vmem:[%s3642_s4 + $0x200] sm:$0xff]  ;;  %v2152_v35 = vld [vmem:[%s3642_s4 + $0x208] sm:$0xff] }
  0x17   :  { %3740 = vst [vmem:[#allocation30_spill] sm:$0xff] %v2022_v39  ;;  %v2157_v37 = vld [vmem:[%s3642_s4 + $0x210] sm:$0xff]  ;;  %v2162_v39 = vld [vmem:[%s3642_s4 + $0x218] sm:$0xff]  ;;  %v2272_v1 = vld [vmem:[%s3642_s4 + $0x2c8] sm:$0xff] }
  0x18   :  { %3741 = vst [vmem:[#allocation31_spill] sm:$0xff] %v2032_v41  ;;  %v2167_v41 = vld [vmem:[%s3642_s4 + $0x220] sm:$0xff]  ;;  %v2302_v3 = vld [vmem:[%s3642_s4 + $0x2f8] sm:$0xff]  ;;  %v2432_v9 = vld [vmem:[%s3642_s4 + $0x3c8] sm:$0xff] }
  0x19   :  { %3742 = vst [vmem:[#allocation32_spill] sm:$0xff] %v2042_v43  ;;  %v2172_v43 = vld [vmem:[%s3642_s4 + $0x228] sm:$0xff]  ;;  %v2322_v5 = vld [vmem:[%s3642_s4 + $0x318] sm:$0xff] }
  0x1a   :  { %3743 = vst [vmem:[#allocation33_spill] sm:$0xff] %v2052_v45  ;;  %v2182_v45 = vld [vmem:[%s3642_s4 + $0x238] sm:$0xff]  ;;  %v2452_v11 = vld [vmem:[%s3642_s4 + $0x3e8] sm:$0xff] }
  0x1b   :  { %3744 = vst [vmem:[#allocation34_spill] sm:$0xff] %v2062_v47  ;;  %v2192_v47 = vld [vmem:[%s3642_s4 + $0x248] sm:$0xff]  ;;  %v2402_v7 = vld [vmem:[%s3642_s4 + $0x398] sm:$0xff] }
  0x1c   :  { %3745 = vst [vmem:[#allocation35_spill] sm:$0xff] %v2072_v49  ;;  %v2202_v49 = vld [vmem:[%s3642_s4 + $0x258] sm:$0xff] }
  0x1d   :  { %3746 = vst [vmem:[#allocation36_spill] sm:$0xff] %v2082_v51  ;;  %v2212_v51 = vld [vmem:[%s3642_s4 + $0x268] sm:$0xff]  ;;  %v2482_v13 = vld [vmem:[%s3642_s4 + $0x418] sm:$0xff] }
  0x1e   :  { %3747 = vst [vmem:[#allocation37_spill] sm:$0xff] %v2092_v53  ;;  %v2222_v53 = vld [vmem:[%s3642_s4 + $0x278] sm:$0xff] }
  0x1f   :  { %3748 = vst [vmem:[#allocation38_spill] sm:$0xff] %v2102_v55  ;;  %v2232_v55 = vld [vmem:[%s3642_s4 + $0x288] sm:$0xff]  ;;  %v2542_v15 = vld [vmem:[%s3642_s4 + $0x478] sm:$0xff] }
  0x20   :  { %3749 = vst [vmem:[#allocation39_spill] sm:$0xff] %v2112_v57  ;;  %v2242_v57 = vld [vmem:[%s3642_s4 + $0x298] sm:$0xff] }
  0x21   :  { %3750 = vst [vmem:[#allocation40_spill] sm:$0xff] %v2122_v59  ;;  %v2252_v59 = vld [vmem:[%s3642_s4 + $0x2a8] sm:$0xff] }
  0x22   :  { %3751 = vst [vmem:[#allocation41_spill] sm:$0xff] %v2132_v61  ;;  %v2262_v61 = vld [vmem:[%s3642_s4 + $0x2b8] sm:$0xff] }
  0x23   :  { %3752 = vst [vmem:[#allocation42_spill] sm:$0xff] %v2142_v63  ;;  %v2282_v63 = vld [vmem:[%s3642_s4 + $0x2d8] sm:$0xff] }
  0x24   :  { %3753 = vst [vmem:[#allocation43_spill] sm:$0xff] %v2147_v33  ;;  %v2292_v33 = vld [vmem:[%s3642_s4 + $0x2e8] sm:$0xff] }
  0x25   :  { %3754 = vst [vmem:[#allocation44_spill] sm:$0xff] %v2152_v35  ;;  %v2177_v35 = vld [vmem:[%s3642_s4 + $0x230] sm:$0xff] }
  0x26   :  { %3755 = vst [vmem:[#allocation45_spill] sm:$0xff] %v2157_v37  ;;  %v2312_v37 = vld [vmem:[%s3642_s4 + $0x308] sm:$0xff] }
  0x27   :  { %3756 = vst [vmem:[#allocation46_spill] sm:$0xff] %v2162_v39  ;;  %v2187_v39 = vld [vmem:[%s3642_s4 + $0x240] sm:$0xff] }
  0x28   :  { %3757 = vst [vmem:[#allocation47_spill] sm:$0xff] %v2167_v41  ;;  %v2382_v41 = vld [vmem:[%s3642_s4 + $0x378] sm:$0xff] }
  0x29   :  { %3758 = vst [vmem:[#allocation48_spill] sm:$0xff] %v2172_v43  ;;  %v2197_v43 = vld [vmem:[%s3642_s4 + $0x250] sm:$0xff] }
  0x2a   :  { %3759 = vst [vmem:[#allocation49_spill] sm:$0xff] %v2177_v35  ;;  %v2412_v35 = vld [vmem:[%s3642_s4 + $0x3a8] sm:$0xff] }
  0x2b   :  { %3760 = vst [vmem:[#allocation50_spill] sm:$0xff] %v2182_v45  ;;  %v2207_v45 = vld [vmem:[%s3642_s4 + $0x260] sm:$0xff] }
  0x2c   :  { %3761 = vst [vmem:[#allocation51_spill] sm:$0xff] %v2187_v39  ;;  %v2442_v39 = vld [vmem:[%s3642_s4 + $0x3d8] sm:$0xff] }
  0x2d   :  { %3762 = vst [vmem:[#allocation52_spill] sm:$0xff] %v2192_v47  ;;  %v2217_v47 = vld [vmem:[%s3642_s4 + $0x270] sm:$0xff] }
  0x2e   :  { %3763 = vst [vmem:[#allocation53_spill] sm:$0xff] %v2197_v43  ;;  %v2472_v43 = vld [vmem:[%s3642_s4 + $0x408] sm:$0xff] }
  0x2f   :  { %3764 = vst [vmem:[#allocation54_spill] sm:$0xff] %v2202_v49  ;;  %v2227_v49 = vld [vmem:[%s3642_s4 + $0x280] sm:$0xff] }
  0x30   :  { %3765 = vst [vmem:[#allocation55_spill] sm:$0xff] %v2207_v45  ;;  %v2532_v45 = vld [vmem:[%s3642_s4 + $0x468] sm:$0xff] }
  0x31   :  { %3766 = vst [vmem:[#allocation56_spill] sm:$0xff] %v2212_v51  ;;  %v2237_v51 = vld [vmem:[%s3642_s4 + $0x290] sm:$0xff] }
  0x32   :  { %3767 = vst [vmem:[#allocation57_spill] sm:$0xff] %v2217_v47 }
  0x33   :  { %3768 = vst [vmem:[#allocation58_spill] sm:$0xff] %v2222_v53  ;;  %v2247_v53 = vld [vmem:[%s3642_s4 + $0x2a0] sm:$0xff] }
  0x34   :  { %3769 = vst [vmem:[#allocation59_spill] sm:$0xff] %v2227_v49 }
  0x35   :  { %3770 = vst [vmem:[#allocation60_spill] sm:$0xff] %v2232_v55  ;;  %v2257_v55 = vld [vmem:[%s3642_s4 + $0x2b0] sm:$0xff] }
  0x36   :  { %3771 = vst [vmem:[#allocation61_spill] sm:$0xff] %v2237_v51 }
  0x37   :  { %3772 = vst [vmem:[#allocation62_spill] sm:$0xff] %v2242_v57  ;;  %v2267_v57 = vld [vmem:[%s3642_s4 + $0x2c0] sm:$0xff] }
  0x38   :  { %3773 = vst [vmem:[#allocation63_spill] sm:$0xff] %v2247_v53 }
  0x39   :  { %3774 = vst [vmem:[#allocation64_spill] sm:$0xff] %v2252_v59  ;;  %v2277_v59 = vld [vmem:[%s3642_s4 + $0x2d0] sm:$0xff] }
  0x3a   :  { %3775 = vst [vmem:[#allocation65_spill] sm:$0xff] %v2257_v55 }
  0x3b   :  { %3776 = vst [vmem:[#allocation66_spill] sm:$0xff] %v2262_v61  ;;  %v2287_v61 = vld [vmem:[%s3642_s4 + $0x2e0] sm:$0xff] }
  0x3c   :  { %3777 = vst [vmem:[#allocation67_spill] sm:$0xff] %v2267_v57 }
  0x3d   :  { %3778 = vst [vmem:[#allocation68_spill] sm:$0xff] %v2272_v1  ;;  %v2297_v1 = vld [vmem:[%s3642_s4 + $0x2f0] sm:$0xff] }
  0x3e   :  { %3779 = vst [vmem:[#allocation69_spill] sm:$0xff] %v2277_v59 }
  0x3f   :  { %3780 = vst [vmem:[#allocation70_spill] sm:$0xff] %v2282_v63  ;;  %v2307_v63 = vld [vmem:[%s3642_s4 + $0x300] sm:$0xff] }
  0x40   :  { %3781 = vst [vmem:[#allocation71_spill] sm:$0xff] %v2287_v61 }
  0x41   :  { %3782 = vst [vmem:[#allocation72_spill] sm:$0xff] %v2292_v33  ;;  %v2317_v33 = vld [vmem:[%s3642_s4 + $0x310] sm:$0xff] }
  0x42   :  { %3783 = vst [vmem:[#allocation73_spill] sm:$0xff] %v2297_v1 }
  0x43   :  { %3784 = vst [vmem:[#allocation74_spill] sm:$0xff] %v2302_v3  ;;  %v2327_v3 = vld [vmem:[%s3642_s4 + $0x320] sm:$0xff] }
  0x44   :  { %3785 = vst [vmem:[#allocation75_spill] sm:$0xff] %v2307_v63  ;;  %v2332_v63 = vld [vmem:[%s3642_s4 + $0x328] sm:$0xff] }
  0x45   :  { %3786 = vst [vmem:[#allocation76_spill] sm:$0xff] %v2312_v37  ;;  %v2337_v37 = vld [vmem:[%s3642_s4 + $0x330] sm:$0xff] }
  0x46   :  { %3787 = vst [vmem:[#allocation77_spill] sm:$0xff] %v2317_v33  ;;  %v2342_v33 = vld [vmem:[%s3642_s4 + $0x338] sm:$0xff] }
  0x47   :  { %3788 = vst [vmem:[#allocation78_spill] sm:$0xff] %v2322_v5  ;;  %v2347_v5 = vld [vmem:[%s3642_s4 + $0x340] sm:$0xff] }
  0x48   :  { %3789 = vst [vmem:[#allocation79_spill] sm:$0xff] %v2327_v3  ;;  %v2352_v3 = vld [vmem:[%s3642_s4 + $0x348] sm:$0xff] }
  0x49   :  { %3790 = vst [vmem:[#allocation80_spill] sm:$0xff] %v2332_v63  ;;  %v2357_v63 = vld [vmem:[%s3642_s4 + $0x350] sm:$0xff] }
  0x4a   :  { %3791 = vst [vmem:[#allocation81_spill] sm:$0xff] %v2337_v37  ;;  %v2362_v37 = vld [vmem:[%s3642_s4 + $0x358] sm:$0xff] }
  0x4b   :  { %3792 = vst [vmem:[#allocation82_spill] sm:$0xff] %v2342_v33  ;;  %v2367_v33 = vld [vmem:[%s3642_s4 + $0x360] sm:$0xff] }
  0x4c   :  { %3793 = vst [vmem:[#allocation83_spill] sm:$0xff] %v2347_v5  ;;  %v2372_v5 = vld [vmem:[%s3642_s4 + $0x368] sm:$0xff] }
  0x4d   :  { %3794 = vst [vmem:[#allocation84_spill] sm:$0xff] %v2352_v3  ;;  %v2377_v3 = vld [vmem:[%s3642_s4 + $0x370] sm:$0xff] }
  0x4e   :  { %3795 = vst [vmem:[#allocation85_spill] sm:$0xff] %v2357_v63  ;;  %v2392_v63 = vld [vmem:[%s3642_s4 + $0x388] sm:$0xff] }
  0x4f   :  { %3796 = vst [vmem:[#allocation86_spill] sm:$0xff] %v2362_v37  ;;  %v2387_v37 = vld [vmem:[%s3642_s4 + $0x380] sm:$0xff] }
  0x50   :  { %3797 = vst [vmem:[#allocation87_spill] sm:$0xff] %v2367_v33  ;;  %v2422_v33 = vld [vmem:[%s3642_s4 + $0x3b8] sm:$0xff] }
  0x51   :  { %3798 = vst [vmem:[#allocation88_spill] sm:$0xff] %v2372_v5  ;;  %v2397_v5 = vld [vmem:[%s3642_s4 + $0x390] sm:$0xff] }
  0x52   :  { %3799 = vst [vmem:[#allocation89_spill] sm:$0xff] %v2377_v3  ;;  %v2462_v3 = vld [vmem:[%s3642_s4 + $0x3f8] sm:$0xff] }
  0x53   :  { %3800 = vst [vmem:[#allocation90_spill] sm:$0xff] %v2382_v41  ;;  %v2407_v41 = vld [vmem:[%s3642_s4 + $0x3a0] sm:$0xff] }
  0x54   :  { %3801 = vst [vmem:[#allocation91_spill] sm:$0xff] %v2387_v37  ;;  %v2512_v37 = vld [vmem:[%s3642_s4 + $0x448] sm:$0xff] }
  0x55   :  { %3802 = vst [vmem:[#allocation92_spill] sm:$0xff] %v2392_v63  ;;  %v2417_v63 = vld [vmem:[%s3642_s4 + $0x3b0] sm:$0xff] }
  0x56   :  { %3803 = vst [vmem:[#allocation93_spill] sm:$0xff] %v2397_v5 }
  0x57   :  { %3804 = vst [vmem:[#allocation94_spill] sm:$0xff] %v2402_v7  ;;  %v2427_v7 = vld [vmem:[%s3642_s4 + $0x3c0] sm:$0xff] }
  0x58   :  { %3805 = vst [vmem:[#allocation95_spill] sm:$0xff] %v2407_v41 }
  0x59   :  { %3806 = vst [vmem:[#allocation96_spill] sm:$0xff] %v2412_v35  ;;  %v2437_v35 = vld [vmem:[%s3642_s4 + $0x3d0] sm:$0xff] }
  0x5a   :  { %3807 = vst [vmem:[#allocation97_spill] sm:$0xff] %v2417_v63 }
  0x5b   :  { %3808 = vst [vmem:[#allocation98_spill] sm:$0xff] %v2422_v33  ;;  %v2447_v33 = vld [vmem:[%s3642_s4 + $0x3e0] sm:$0xff] }
  0x5c   :  { %3809 = vst [vmem:[#allocation99_spill] sm:$0xff] %v2427_v7 }
  0x5d   :  { %3810 = vst [vmem:[#allocation100_spill] sm:$0xff] %v2432_v9  ;;  %v2457_v9 = vld [vmem:[%s3642_s4 + $0x3f0] sm:$0xff] }
  0x5e   :  { %3811 = vst [vmem:[#allocation101_spill] sm:$0xff] %v2437_v35 }
  0x5f   :  { %3812 = vst [vmem:[#allocation102_spill] sm:$0xff] %v2442_v39  ;;  %v2467_v39 = vld [vmem:[%s3642_s4 + $0x400] sm:$0xff] }
  0x60   :  { %3813 = vst [vmem:[#allocation103_spill] sm:$0xff] %v2447_v33 }
  0x61   :  { %3814 = vst [vmem:[#allocation104_spill] sm:$0xff] %v2452_v11  ;;  %v2477_v11 = vld [vmem:[%s3642_s4 + $0x410] sm:$0xff] }
  0x62   :  { %3815 = vst [vmem:[#allocation105_spill] sm:$0xff] %v2457_v9 }
  0x63   :  { %3816 = vst [vmem:[#allocation106_spill] sm:$0xff] %v2462_v3  ;;  %v2487_v3 = vld [vmem:[%s3642_s4 + $0x420] sm:$0xff] }
  0x64   :  { %3817 = vst [vmem:[#allocation107_spill] sm:$0xff] %v2467_v39  ;;  %v2492_v39 = vld [vmem:[%s3642_s4 + $0x428] sm:$0xff] }
  0x65   :  { %3818 = vst [vmem:[#allocation108_spill] sm:$0xff] %v2472_v43  ;;  %v2497_v43 = vld [vmem:[%s3642_s4 + $0x430] sm:$0xff] }
  0x66   :  { %3819 = vst [vmem:[#allocation109_spill] sm:$0xff] %v2477_v11  ;;  %v2502_v11 = vld [vmem:[%s3642_s4 + $0x438] sm:$0xff] }
  0x67   :  { %3820 = vst [vmem:[#allocation110_spill] sm:$0xff] %v2482_v13  ;;  %v2507_v13 = vld [vmem:[%s3642_s4 + $0x440] sm:$0xff] }
  0x68   :  { %3821 = vst [vmem:[#allocation111_spill] sm:$0xff] %v2487_v3  ;;  %v2522_v3 = vld [vmem:[%s3642_s4 + $0x458] sm:$0xff] }
  0x69   :  { %3822 = vst [vmem:[#allocation112_spill] sm:$0xff] %v2492_v39  ;;  %v2517_v39 = vld [vmem:[%s3642_s4 + $0x450] sm:$0xff] }
  0x6a   :  { %3823 = vst [vmem:[#allocation113_spill] sm:$0xff] %v2497_v43 }
  0x6b   :  { %3824 = vst [vmem:[#allocation114_spill] sm:$0xff] %v2502_v11  ;;  %v2527_v11 = vld [vmem:[%s3642_s4 + $0x460] sm:$0xff] }
  0x6c   :  { %3825 = vst [vmem:[#allocation115_spill] sm:$0xff] %v2507_v13 }
  0x6d   :  { %3826 = vst [vmem:[#allocation116_spill] sm:$0xff] %v2512_v37  ;;  %v2537_v37 = vld [vmem:[%s3642_s4 + $0x470] sm:$0xff] }
  0x6e   :  { %3827 = vst [vmem:[#allocation117_spill] sm:$0xff] %v2517_v39 }
  0x6f   :  { %3828 = vst [vmem:[#allocation118_spill] sm:$0xff] %v2522_v3 }
  0x70   :  { %3829 = vst [vmem:[#allocation119_spill] sm:$0xff] %v2527_v11 }
  0x71   :  { %3830 = vst [vmem:[#allocation120_spill] sm:$0xff] %v2532_v45 }
  0x72   :  { %3831 = vst [vmem:[#allocation121_spill] sm:$0xff] %v2537_v37 }
  0x73   :  { %3832 = vst [vmem:[#allocation122_spill] sm:$0xff] %v2542_v15 }
  0x74   :  { %322 = vsyncadd [#allocation3], 18432  ;;  %v334_v3 = vld [vmem:[%s3639_s1 + $0x50] sm:$0xff]  ;;  %v335_v5 = vld [vmem:[%s3639_s1 + $0x58] sm:$0xff]  ;;  %vm351_vm0 = vcmask 195584  }
  0x75   :  { %368 = vmatpush.msra.mxu0 %v334_v3  ;;  %388 = vmatpush.msra.mxu1 %v335_v5  ;;  %v336_v45 = vld [vmem:[%s3639_s1 + $0x60] sm:$0xff]  ;;  %v337_v47 = vld [vmem:[%s3639_s1 + $0x68] sm:$0xff]  ;;  %v330_v43 = vld [vmem:[%s3639_s1 + $0x30] sm:$0xff] }
  0x76   :  { %v329_v15 = vld [vmem:[%s3639_s1 + $0x28] sm:$0xff]  ;;  %408 = vmatpush.msra.mxu2 %v336_v45  ;;  %428 = vmatpush.msra.mxu3 %v337_v47  ;;  %v331_v3 = vld [vmem:[%s3639_s1 + $0x38] sm:$0xff]  ;;  %v332_v5 = vld [vmem:[%s3639_s1 + $0x40] sm:$0xff] }
  0x77   :  { %369 = vmatpush.msra.mxu0 %v329_v15  ;;  %389 = vmatpush.msra.mxu1 %v330_v43  ;;  %v324_v17 = vld [vmem:[%s3639_s1] sm:$0xff]  ;;  %v325_v45 = vld [vmem:[%s3639_s1 + $0x8] sm:$0xff]  ;;  %v326_v47 = vld [vmem:[%s3639_s1 + $0x10] sm:$0xff] }
  0x78   :  { %409 = vmatpush.msra.mxu2 %v331_v3  ;;  %429 = vmatpush.msra.mxu3 %v332_v5  ;;  %v327_v41 = vld [vmem:[%s3639_s1 + $0x18] sm:$0xff]  ;;  %v323_v15 = vld [vmem:[%s3638_s0] sm:$0x1]  ;;  %v338_v43 = vld [vmem:[%s3639_s1 + $0x70] sm:$0xff] }
  0x79   :  { %370 = vmatpush.msra.mxu0 %v324_v17  ;;  %390 = vmatpush.msra.mxu1 %v325_v45  ;;  %v333_v3 = vld [vmem:[%s3639_s1 + $0x48] sm:$0xff]  ;;  %v328_v17 = vld [vmem:[%s3639_s1 + $0x20] sm:$0xff]  ;;  %v600_v29 = vld [vmem:[%s3641_s3 + $0x190] sm:$0xff] }
  0x7a   :  { %410 = vmatpush.msra.mxu2 %v326_v47  ;;  %430 = vmatpush.msra.mxu3 %v327_v41  ;;  %v339_v41 = vld [vmem:[%s3640_s2] sm:$0x1f]  ;;  %v615_v27 = vld [vmem:[%s3641_s3 + $0x208] sm:$0xff] }
  0x7b   :  { %1668 = vmatmul.msk.f32.vlgmr.msra.gmra.mxu0 %vm351_vm0, %v323_v15  ;;  %1669 = vmatmul.msk.f32.vlgmr.msra.gmra.mxu1 %vm351_vm0, %v323_v15  ;;  %v341_v5 = vperm.slane %v339_v41, 0  ;;  %v342_v45 = vperm.slane %v339_v41, 1  ;;  %v344_v53 = vperm.slane %v339_v41, 3  ;;  %v345_v55 = vperm.slane %v339_v41, 4  ;;  %v570_v11 = vld [vmem:[%s3641_s3 + $0xa0] sm:$0xff]  ;;  %v551_v0 = vld [vmem:[%s3641_s3 + $0x8] sm:$0xff] }
  0x7c   :  { %1670 = vmatmul.msk.f32.vlgmr.msra.gmra.mxu2 %vm351_vm0, %v323_v15  ;;  %1671 = vmatmul.msk.f32.vlgmr.msra.gmra.mxu3 %vm351_vm0, %v323_v15  ;;  %v590_v61 = vld [vmem:[%s3641_s3 + $0x140] sm:$0xff] }
  0x7d   :  { %448 = vmatpush.msrb.mxu0 %v338_v43  ;;  %v343_v43 = vperm.slane %v339_v41, 2  ;;  %v630_v1 = vld [vmem:[%s3641_s3 + $0x280] sm:$0xff]  ;;  %925 = vmatpush.msrb.mxu1 %v1977_v30 }
  0x7e   :  { %1708 = vmatpush.msrb.mxu3 %v1977_v30 }
  0x7f   :  { %449 = vmatpush.msrb.mxu0 %v333_v3 }
  0x81   :  { %450 = vmatpush.msrb.mxu0 %v328_v17 }
  0x83   :  { %1672 = vmatmul.msk.f32.vlgmr.msrb.gmra.mxu0 %vm351_vm0, %v323_v15 }
  0xf8   :  { %v372_v47 = vpop.f32.mrf.mxu0  ;;  %v392_v49 = vpop.f32.mrf.mxu1 }
  0xf9   :  { %v373_v51 = vadd.f32 %v372_v47, %v341_v5  ;;  %v393_v19 = vadd.f32 %v392_v49, %v342_v45 }
  0xfb   :  { %v455_v63 = vsub.f32 0.0, %v373_v51  ;;  %v456_v13 = vsub.f32 0.0, %v393_v19 }
  0xfd   :  { %v460_v21 = vmul.f32 1.442695, %v455_v63  ;;  %v462_v7 = vmul.f32 1.442695, %v456_v13 }
  0xff   :  { %1743 = vpow2.f32 %v460_v21  ;;  %v412_v3 = vpop.f32.mrf.mxu2  ;;  %v432_v15 = vpop.f32.mrf.mxu3 }
 0x100   :  { %1745 = vpow2.f32 %v462_v7  ;;  %v413_v17 = vadd.f32 %v412_v3, %v343_v43  ;;  %v433_v39 = vadd.f32 %v432_v15, %v344_v53  ;;  %v452_v23 = vpop.f32.mrf.mxu0 }
 0x101   :  { %v453_v35 = vadd.f32 %v452_v23, %v345_v55 }
 0x102   :  { %v457_v57 = vsub.f32 0.0, %v413_v17  ;;  %v458_v25 = vsub.f32 0.0, %v433_v39 }
 0x103   :  { %v459_v49 = vsub.f32 0.0, %v453_v35 }
 0x104   :  { %v464_v33 = vmul.f32 1.442695, %v457_v57  ;;  %v466_v5 = vmul.f32 1.442695, %v458_v25 }
 0x105   :  { %v1744_v51 = vpop.eup %1743  ;;  %v468_v13 = vmul.f32 1.442695, %v459_v49 }
 0x106   :  { %v1746_v19 = vpop.eup %1745  ;;  %v470_v45 = vadd.f32 1.0, %v1744_v51  ;;  %1747 = vpow2.f32 %v464_v33 }
 0x107   :  { %v471_v63 = vadd.f32 1.0, %v1746_v19  ;;  %1749 = vpow2.f32 %v466_v5 }
 0x108   :  { %1751 = vrcp.f32 %v470_v45  ;;  %v484_v33 = vand.u32 2147483647, %v470_v45  ;;  %v486_v41 = vand.u32 2147483648, %v470_v45  ;;  %vm480_vm2 = vweird.f32 %v470_v45 }
 0x109   :  { %1753 = vrcp.f32 %v471_v63  ;;  %v499_v3 = vand.u32 2147483647, %v471_v63  ;;  %v501_v15 = vand.u32 2147483648, %v471_v63  ;;  %vm495_vm3 = vweird.f32 %v471_v63 }
 0x10a   :  { %1755 = vpow2.f32 %v468_v13  ;;  %vm2603_vm5 = vcmp.eq.f32.partialorder %v484_v33, 8.507059e+37  ;;  %v487_v13 = vor.u32 1.1754944e-38, %v486_v41 }
 0x10b   :  { %vm2625_vm7 = vcmp.eq.f32.partialorder %v499_v3, 8.507059e+37  ;;  %v575_v3 = vld [vmem:[%s3641_s3 + $0xc8] sm:$0xff] }
 0x10c   :  { %v1748_v21 = vpop.eup %1747 }
 0x10d   :  { %v1750_v7 = vpop.eup %1749  ;;  %v2595_v53 = vadd.f32 1.0, %v1748_v21 }
 0x10e   :  { %v1752_v23 = vpop.eup %1751  ;;  %v2597_v55 = vadd.f32 1.0, %v1750_v7 }
 0x10f   :  { %v1754_v39 = vpop.eup %1753  ;;  %v476_v25 = vmul.f32 %v1752_v23, %v470_v45  ;;  %1757 = vrcp.f32 %v2595_v53  ;;  %vm481_vm1 = vweird.f32 %v1752_v23  ;;  %v550_v45 = vld [vmem:[%s3641_s3] sm:$0xff]  ;;  %vm510_vm10 = vweird.f32 %v2595_v53 }
 0x110   :  { %v491_v35 = vmul.f32 %v1754_v39, %v471_v63  ;;  %1759 = vrcp.f32 %v2597_v55  ;;  %v1756_v47 = vpop.eup %1755  ;;  %vm496_vm4 = vweird.f32 %v1754_v39  ;;  %vm2609_vm6 = vmor %vm480_vm2, %vm481_vm1  ;;  %v595_v63 = vld [vmem:[%s3641_s3 + $0x168] sm:$0xff]  ;;  %vm525_vm14 = vweird.f32 %v2597_v55 }
 0x111   :  { %v477_v57 = vsub.f32 1.0, %v476_v25  ;;  %v2607_v21 = vadd.f32 1.0, %v1756_v47  ;;  %v555_v25 = vld [vmem:[%s3641_s3 + $0x28] sm:$0xff]  ;;  %v502_v47 = vor.u32 1.1754944e-38, %v501_v15  ;;  %v580_v15 = vld [vmem:[%s3641_s3 + $0xf0] sm:$0xff]  ;;  %vm2649_vm8 = vmor %vm495_vm3, %vm496_vm4 }
 0x112   :  { %v492_v43 = vsub.f32 1.0, %v491_v35  ;;  %v560_v35 = vld [vmem:[%s3641_s3 + $0x50] sm:$0xff] }
 0x113   :  { %v478_v17 = vmul.f32 %v1752_v23, %v477_v57  ;;  %v565_v57 = vld [vmem:[%s3641_s3 + $0x78] sm:$0xff]  ;;  %1761 = vrcp.f32 %v2607_v21  ;;  %vm540_vm1 = vweird.f32 %v2607_v21 }
 0x114   :  { %v493_v5 = vmul.f32 %v1754_v39, %v492_v43 }
 0x115   :  { %v2601_v49 = vpop.eup %1757  ;;  %v479_v51 = vadd.f32 %v1752_v23, %v478_v17 }
 0x116   :  { %v494_v33 = vadd.f32 %v1754_v39, %v493_v5  ;;  %v506_v43 = vmul.f32 %v2601_v49, %v2595_v53  ;;  %v2631_v17 = vpop.eup %1759  ;;  %v585_v5 = vld [vmem:[%s3641_s3 + $0x118] sm:$0xff]  ;;  %vm511_vm9 = vweird.f32 %v2601_v49 }
 0x117   :  { %v483_v59 = vsel %vm2609_vm6, %v1752_v23, %v479_v51  ;;  %v2671_v19 = vmul.f32 %v2631_v17, %v2597_v55  ;;  %v625_v23 = vld [vmem:[%s3641_s3 + $0x258] sm:$0xff]  ;;  %vm526_vm11 = vweird.f32 %v2631_v17  ;;  %vm512_vm12 = vmor %vm510_vm10, %vm511_vm9 }
 0x118   :  { %v488_v9 = vsel %vm2603_vm5, %v487_v13, %v483_v59  ;;  %v498_v51 = vsel %vm2649_vm8, %v1754_v39, %v494_v33  ;;  %v507_v7 = vsub.f32 1.0, %v506_v43  ;;  %v605_v59 = vld [vmem:[%s3641_s3 + $0x1b8] sm:$0xff]  ;;  %v610_v13 = vld [vmem:[%s3641_s3 + $0x1e0] sm:$0xff]  ;;  %v620_v43 = vld [vmem:[%s3641_s3 + $0x230] sm:$0xff] }
 0x119   :  { %v635_v37 = vperm.slane %v488_v9, 0  ;;  %v503_v39 = vsel %vm2625_vm7, %v502_v47, %v498_v51  ;;  %v522_v47 = vsub.f32 1.0, %v2671_v19  ;;  %v561_v19 = vld [vmem:[%s3641_s3 + $0x58] sm:$0xff]  ;;  %vm527_vm15 = vmor %vm525_vm14, %vm526_vm11 }
 0x11a   :  { %v636_v9 = vperm.slane %v503_v39, 0  ;;  %v508_v41 = vmul.f32 %v2601_v49, %v507_v7  ;;  %v556_v7 = vld [vmem:[%s3641_s3 + $0x30] sm:$0xff]  ;;  %v566_v39 = vld [vmem:[%s3641_s3 + $0x80] sm:$0xff] }
 0x11b   :  { %v2698_v51 = vmul.f32 %v635_v37, %v550_v45  ;;  %v2700_v33 = vmul.f32 %v635_v37, %v555_v25  ;;  %v2702_v31 = vmul.f32 %v635_v37, %v560_v35  ;;  %v2704_v32 = vmul.f32 %v635_v37, %v565_v57 }
 0x11c   :  { %v2717_v45 = vmul.f32 %v635_v37, %v570_v11  ;;  %v2719_v25 = vmul.f32 %v635_v37, %v575_v3  ;;  %v2721_v35 = vmul.f32 %v635_v37, %v580_v15  ;;  %v2723_v57 = vmul.f32 %v635_v37, %v585_v5 }
 0x11d   :  { %3841 = vst [vmem:[#allocation123_spill] sm:$0xff] %v2700_v33  ;;  %v2734_v11 = vmul.f32 %v635_v37, %v590_v61  ;;  %v2736_v3 = vmul.f32 %v635_v37, %v595_v63  ;;  %v2738_v15 = vmul.f32 %v635_v37, %v600_v29  ;;  %v2740_v5 = vmul.f32 %v635_v37, %v605_v59 }
 0x11e   :  { %3842 = vst [vmem:[#allocation124_spill] sm:$0xff] %v2702_v31  ;;  %v576_v31 = vld [vmem:[%s3641_s3 + $0xd0] sm:$0xff]  ;;  %v2751_v61 = vmul.f32 %v635_v37, %v610_v13  ;;  %v2753_v63 = vmul.f32 %v635_v37, %v615_v27  ;;  %v2755_v29 = vmul.f32 %v635_v37, %v620_v43  ;;  %v2757_v59 = vmul.f32 %v635_v37, %v625_v23  ;;  %v2768_v13 = vpop.eup %1761  ;;  %v611_v43 = vld [vmem:[%s3641_s3 + $0x1e8] sm:$0xff] }
 0x11f   :  { %3843 = vst [vmem:[#allocation125_spill] sm:$0xff] %v2704_v32  ;;  %v571_v32 = vld [vmem:[%s3641_s3 + $0xa8] sm:$0xff]  ;;  %v2770_v27 = vmul.f32 %v635_v37, %v630_v1  ;;  %v616_v23 = vld [vmem:[%s3641_s3 + $0x210] sm:$0xff]  ;;  %v626_v1 = vld [vmem:[%s3641_s3 + $0x260] sm:$0xff]  ;;  %v2797_v33 = vmul.f32 %v636_v9, %v576_v31  ;;  %vm541_vm2 = vweird.f32 %v2768_v13 }
 0x120   :  { %3844 = vst [vmem:[#allocation126_spill] sm:$0xff] %v2717_v45  ;;  %v601_v45 = vld [vmem:[%s3641_s3 + $0x198] sm:$0xff]  ;;  %v631_v37 = vld [vmem:[%s3641_s3 + $0x288] sm:$0xff]  ;;  %v2817_v31 = vmul.f32 %v636_v9, %v626_v1  ;;  %v572_v1 = vld [vmem:[%s3641_s3 + $0xb0] sm:$0xff] }
 0x121   :  { %3845 = vst [vmem:[#allocation127_spill] sm:$0xff] %v2719_v25  ;;  %v591_v25 = vld [vmem:[%s3641_s3 + $0x148] sm:$0xff]  ;;  %vm542_vm3 = vmor %vm540_vm1, %vm541_vm2 }
 0x122   :  { %3846 = vst [vmem:[#allocation128_spill] sm:$0xff] %v2721_v35  ;;  %v586_v35 = vld [vmem:[%s3641_s3 + $0x120] sm:$0xff] }
 0x123   :  { %3847 = vst [vmem:[#allocation129_spill] sm:$0xff] %v2723_v57  ;;  %v581_v57 = vld [vmem:[%s3641_s3 + $0xf8] sm:$0xff] }
 0x124   :  { %3848 = vst [vmem:[#allocation130_spill] sm:$0xff] %v2734_v11  ;;  %v596_v11 = vld [vmem:[%s3641_s3 + $0x170] sm:$0xff] }
 0x125   :  { %3849 = vst [vmem:[#allocation131_spill] sm:$0xff] %v2736_v3  ;;  %v2811_v3 = vmul.f32 %v636_v9, %v611_v43  ;;  %v562_v43 = vld [vmem:[%s3641_s3 + $0x60] sm:$0xff] }
 0x126   :  { %3850 = vst [vmem:[#allocation132_spill] sm:$0xff] %v2738_v15  ;;  %v2795_v15 = vmul.f32 %v636_v9, %v571_v32 }
 0x127   :  { %3851 = vst [vmem:[#allocation133_spill] sm:$0xff] %v2740_v5  ;;  %v606_v5 = vld [vmem:[%s3641_s3 + $0x1c0] sm:$0xff] }
 0x128   :  { %3852 = vst [vmem:[#allocation134_spill] sm:$0xff] %v2751_v61  ;;  %v2785_v61 = vmul.f32 %v636_v9, %v561_v19  ;;  %v2803_v19 = vmul.f32 %v636_v9, %v591_v25  ;;  %v523_v25 = vmul.f32 %v2631_v17, %v522_v47 }
 0x129   :  { %3853 = vst [vmem:[#allocation135_spill] sm:$0xff] %v2753_v63  ;;  %v2783_v63 = vmul.f32 %v636_v9, %v556_v7  ;;  %v2801_v7 = vmul.f32 %v636_v9, %v586_v35  ;;  %v509_v35 = vadd.f32 %v2601_v49, %v508_v41  ;;  %v536_v41 = vmul.f32 %v2768_v13, %v2607_v21 }
 0x12a   :  { %3854 = vst [vmem:[#allocation136_spill] sm:$0xff] %v2755_v29  ;;  %v2781_v29 = vmul.f32 %v636_v9, %v551_v0  ;;  %v2799_v0 = vmul.f32 %v636_v9, %v581_v57  ;;  %v2819_v57 = vmul.f32 %v636_v9, %v631_v37  ;;  %v524_v37 = vadd.f32 %v2631_v17, %v523_v25  ;;  %v587_v25 = vld [vmem:[%s3641_s3 + $0x128] sm:$0xff] }
 0x12b   :  { %3855 = vst [vmem:[#allocation137_spill] sm:$0xff] %v2757_v59  ;;  %v621_v59 = vld [vmem:[%s3641_s3 + $0x238] sm:$0xff]  ;;  %v513_v47 = vsel %vm512_vm12, %v2601_v49, %v509_v35  ;;  %v582_v35 = vld [vmem:[%s3641_s3 + $0x100] sm:$0xff] }
 0x12c   :  { %3856 = vst [vmem:[#allocation138_spill] sm:$0xff] %v2770_v27  ;;  %v2793_v27 = vmul.f32 %v636_v9, %v566_v39  ;;  %v2813_v39 = vmul.f32 %v636_v9, %v616_v23  ;;  %v2815_v32 = vmul.f32 %v636_v9, %v621_v59  ;;  %v3875_v59 = vand.u32 2147483647, %v2595_v53  ;;  %v567_v23 = vld [vmem:[%s3641_s3 + $0x88] sm:$0xff] }
 0x12d   :  { %3857 = vst [vmem:[#allocation139_spill] sm:$0xff] %v2781_v29  ;;  %v2809_v29 = vmul.f32 %v636_v9, %v606_v5  ;;  %v552_v5 = vld [vmem:[%s3641_s3 + $0x10] sm:$0xff] }
 0x12e   :  { %3858 = vst [vmem:[#allocation140_spill] sm:$0xff] %v2783_v63  ;;  %v2807_v63 = vmul.f32 %v636_v9, %v601_v45  ;;  %v3874_v45 = vand.u32 2147483648, %v2595_v53  ;;  %vm515_vm13 = vcmp.eq.f32.partialorder %v3875_v59, 8.507059e+37  ;;  %v577_v53 = vld [vmem:[%s3641_s3 + $0xd8] sm:$0xff] }
 0x12f   :  { %3859 = vst [vmem:[#allocation141_spill] sm:$0xff] %v2785_v61  ;;  %v2805_v61 = vmul.f32 %v636_v9, %v596_v11  ;;  %v557_v9 = vld [vmem:[%s3641_s3 + $0x38] sm:$0xff] }
 0x130   :  { %3860 = vst [vmem:[#allocation142_spill] sm:$0xff] %v2793_v27  ;;  %v517_v11 = vor.u32 1.1754944e-38, %v3874_v45  ;;  %v3876_v45 = vand.u32 2147483648, %v2597_v55 }
 0x131   :  { %3861 = vst [vmem:[#allocation143_spill] sm:$0xff] %v2795_v15 }
 0x132   :  { %3862 = vst [vmem:[#allocation144_spill] sm:$0xff] %v2797_v33  ;;  %v518_v49 = vsel %vm515_vm13, %v517_v11, %v513_v47  ;;  %v532_v59 = vor.u32 1.1754944e-38, %v3876_v45  ;;  %v592_v11 = vld [vmem:[%s3641_s3 + $0x150] sm:$0xff]  ;;  %v597_v47 = vld [vmem:[%s3641_s3 + $0x178] sm:$0xff]  ;;  %v607_v45 = vld [vmem:[%s3641_s3 + $0x1c8] sm:$0xff] }
 0x133   :  { %3863 = vst [vmem:[#allocation145_spill] sm:$0xff] %v2799_v0  ;;  %v3877_v0 = vand.u32 2147483647, %v2597_v55  ;;  %v617_v55 = vld [vmem:[%s3641_s3 + $0x218] sm:$0xff] }
 0x134   :  { %3864 = vst [vmem:[#allocation146_spill] sm:$0xff] %v2801_v7  ;;  %v637_v7 = vperm.slane %v518_v49, 0 }
 0x135   :  { %3865 = vst [vmem:[#allocation147_spill] sm:$0xff] %v2803_v19  ;;  %vm530_vm0 = vcmp.eq.f32.partialorder %v3877_v0, 8.507059e+37  ;;  %v622_v0 = vld [vmem:[%s3641_s3 + $0x240] sm:$0xff] }
 0x136   :  { %3866 = vst [vmem:[#allocation148_spill] sm:$0xff] %v2805_v61  ;;  %v2895_v15 = vmul.f32 %v637_v7, %v557_v9  ;;  %v2906_v27 = vmul.f32 %v637_v7, %v577_v53  ;;  %v2915_v9 = vmul.f32 %v637_v7, %v592_v11  ;;  %v563_v53 = vld [vmem:[%s3641_s3 + $0x68] sm:$0xff]  ;;  %v2934_v11 = vmul.f32 %v637_v7, %v617_v55  ;;  %v588_v55 = vld [vmem:[%s3641_s3 + $0x130] sm:$0xff] }
 0x137   :  { %3867 = vst [vmem:[#allocation149_spill] sm:$0xff] %v2807_v63  ;;  %v2910_v63 = vmul.f32 %v637_v7, %v587_v25 }
 0x138   :  { %3868 = vst [vmem:[#allocation150_spill] sm:$0xff] %v2809_v29  ;;  %v2908_v29 = vmul.f32 %v637_v7, %v582_v35  ;;  %v568_v35 = vld [vmem:[%s3641_s3 + $0x90] sm:$0xff] }
 0x139   :  { %3869 = vst [vmem:[#allocation151_spill] sm:$0xff] %v2811_v3  ;;  %v2904_v3 = vmul.f32 %v637_v7, %v572_v1  ;;  %v558_v1 = vld [vmem:[%s3641_s3 + $0x40] sm:$0xff] }
 0x13a   :  { %3870 = vst [vmem:[#allocation152_spill] sm:$0xff] %v2813_v39  ;;  %v2893_v39 = vmul.f32 %v637_v7, %v552_v5  ;;  %v553_v5 = vld [vmem:[%s3641_s3 + $0x18] sm:$0xff] }
 0x13b   :  { %3871 = vst [vmem:[#allocation153_spill] sm:$0xff] %v2815_v32  ;;  %v612_v32 = vld [vmem:[%s3641_s3 + $0x1f0] sm:$0xff] }
 0x13c   :  { %3872 = vst [vmem:[#allocation154_spill] sm:$0xff] %v2817_v31  ;;  %v528_v31 = vsel %vm527_vm15, %v2631_v17, %v524_v37  ;;  %v546_v17 = vand.u32 2147483648, %v2607_v21  ;;  %v627_v37 = vld [vmem:[%s3641_s3 + $0x268] sm:$0xff]  ;;  %v2932_v25 = vmul.f32 %v637_v7, %v612_v32 }
 0x13d   :  { %3873 = vst [vmem:[#allocation155_spill] sm:$0xff] %v2819_v57  ;;  %v537_v57 = vsub.f32 1.0, %v536_v41  ;;  %v602_v41 = vld [vmem:[%s3641_s3 + $0x1a0] sm:$0xff]  ;;  %v533_v33 = vsel %vm530_vm0, %v532_v59, %v528_v31  ;;  %v2897_v31 = vmul.f32 %v637_v7, %v562_v43  ;;  %v632_v59 = vld [vmem:[%s3641_s3 + $0x290] sm:$0xff]  ;;  %v2917_v43 = vmul.f32 %v637_v7, %v597_v47 }
 0x13e   :  { %3878 = vst [vmem:[#allocation156_spill] sm:$0xff] %v2893_v39  ;;  %v2936_v47 = vmul.f32 %v637_v7, %v622_v0  ;;  %v2949_v32 = vmul.f32 %v637_v7, %v632_v59  ;;  %v593_v0 = vld [vmem:[%s3641_s3 + $0x158] sm:$0xff]  ;;  %v608_v59 = vld [vmem:[%s3641_s3 + $0x1d0] sm:$0xff] }
 0x13f   :  { %v538_v49 = vmul.f32 %v2768_v13, %v537_v57  ;;  %3879 = vst [vmem:[#allocation157_spill] sm:$0xff] %v2895_v15  ;;  %v2899_v57 = vmul.f32 %v637_v7, %v567_v23  ;;  %v2919_v23 = vmul.f32 %v637_v7, %v602_v41  ;;  %v2938_v41 = vmul.f32 %v637_v7, %v627_v37  ;;  %v598_v37 = vld [vmem:[%s3641_s3 + $0x180] sm:$0xff] }
 0x140   :  { %3880 = vst [vmem:[#allocation158_spill] sm:$0xff] %v2897_v31 }
 0x141   :  { %3881 = vst [vmem:[#allocation159_spill] sm:$0xff] %v2899_v57  ;;  %v2921_v57 = vmul.f32 %v637_v7, %v607_v45  ;;  %v573_v45 = vld [vmem:[%s3641_s3 + $0xb8] sm:$0xff]  ;;  %v603_v7 = vld [vmem:[%s3641_s3 + $0x1a8] sm:$0xff] }
 0x142   :  { %3882 = vst [vmem:[#allocation160_spill] sm:$0xff] %v2904_v3 }
 0x143   :  { %3883 = vst [vmem:[#allocation161_spill] sm:$0xff] %v2906_v27 }
 0x144   :  { %3884 = vst [vmem:[#allocation162_spill] sm:$0xff] %v2908_v29 }
 0x145   :  { %3885 = vst [vmem:[#allocation163_spill] sm:$0xff] %v2910_v63 }
 0x146   :  { %3886 = vst [vmem:[#allocation164_spill] sm:$0xff] %v2915_v9  ;;  %v628_v9 = vld [vmem:[%s3641_s3 + $0x270] sm:$0xff] }
 0x147   :  { %3887 = vst [vmem:[#allocation165_spill] sm:$0xff] %v2917_v43  ;;  %v623_v43 = vld [vmem:[%s3641_s3 + $0x248] sm:$0xff] }
 0x148   :  { %3888 = vst [vmem:[#allocation166_spill] sm:$0xff] %v2919_v23  ;;  %v583_v23 = vld [vmem:[%s3641_s3 + $0x108] sm:$0xff] }
 0x149   :  { %3889 = vst [vmem:[#allocation167_spill] sm:$0xff] %v2921_v57  ;;  %v578_v57 = vld [vmem:[%s3641_s3 + $0xe0] sm:$0xff] }
 0x14a   :  { %3890 = vst [vmem:[#allocation168_spill] sm:$0xff] %v2932_v25  ;;  %v618_v25 = vld [vmem:[%s3641_s3 + $0x220] sm:$0xff] }
 0x14b   :  { %3891 = vst [vmem:[#allocation169_spill] sm:$0xff] %v2934_v11  ;;  %v547_v11 = vor.u32 1.1754944e-38, %v546_v17  ;;  %v633_v17 = vld [vmem:[%s3641_s3 + $0x298] sm:$0xff] }
 0x14c   :  { %3892 = vst [vmem:[#allocation170_spill] sm:$0xff] %v2936_v47  ;;  %v539_v47 = vadd.f32 %v2768_v13, %v538_v49 }
 0x14d   :  { %3893 = vst [vmem:[#allocation171_spill] sm:$0xff] %v2938_v41  ;;  %v638_v41 = vperm.slane %v533_v33, 0  ;;  %v544_v33 = vand.u32 2147483647, %v2607_v21  ;;  %v569_v21 = vld [vmem:[%s3641_s3 + $0x98] sm:$0xff] }
 0x14e   :  { %3894 = vst [vmem:[#allocation172_spill] sm:$0xff] %v2949_v32  ;;  %v613_v32 = vld [vmem:[%s3641_s3 + $0x1f8] sm:$0xff] }
 0x14f   :  { %v2982_v63 = vmul.f32 %v638_v41, %v553_v5  ;;  %v2984_v49 = vmul.f32 %v638_v41, %v558_v1  ;;  %v2986_v29 = vmul.f32 %v638_v41, %v563_v53  ;;  %v2988_v27 = vmul.f32 %v638_v41, %v568_v35 }
 0x150   :  { %v2993_v3 = vmul.f32 %v638_v41, %v573_v45  ;;  %v2995_v31 = vmul.f32 %v638_v41, %v578_v57  ;;  %v2997_v15 = vmul.f32 %v638_v41, %v583_v23  ;;  %v2999_v39 = vmul.f32 %v638_v41, %v588_v55  ;;  %v554_v23 = vld [vmem:[%s3641_s3 + $0x20] sm:$0xff] }
 0x151   :  { %3895 = vst [vmem:[#allocation173_spill] sm:$0xff] %v2986_v29  ;;  %v3001_v5 = vmul.f32 %v638_v41, %v593_v0  ;;  %v3003_v1 = vmul.f32 %v638_v41, %v598_v37  ;;  %v3005_v53 = vmul.f32 %v638_v41, %v603_v7  ;;  %v3007_v35 = vmul.f32 %v638_v41, %v608_v59  ;;  %v589_v0 = vld [vmem:[%s3641_s3 + $0x138] sm:$0xff]  ;;  %v599_v37 = vld [vmem:[%s3641_s3 + $0x188] sm:$0xff]  ;;  %v604_v59 = vld [vmem:[%s3641_s3 + $0x1b0] sm:$0xff] }
 0x152   :  { %3896 = vst [vmem:[#allocation174_spill] sm:$0xff] %v2988_v27  ;;  %v3009_v27 = vmul.f32 %v638_v41, %v613_v32  ;;  %v3011_v29 = vmul.f32 %v638_v41, %v618_v25  ;;  %v3013_v45 = vmul.f32 %v638_v41, %v623_v43  ;;  %v3015_v57 = vmul.f32 %v638_v41, %v628_v9  ;;  %v559_v43 = vld [vmem:[%s3641_s3 + $0x48] sm:$0xff]  ;;  %v564_v9 = vld [vmem:[%s3641_s3 + $0x70] sm:$0xff] }
 0x153   :  { %3897 = vst [vmem:[#allocation175_spill] sm:$0xff] %v2995_v31  ;;  %v3024_v55 = vmul.f32 %v638_v41, %v633_v17  ;;  %v543_v32 = vsel %vm542_vm3, %v2768_v13, %v539_v47  ;;  %vm545_vm4 = vcmp.eq.f32.partialorder %v544_v33, 8.507059e+37  ;;  %v574_v41 = vld [vmem:[%s3641_s3 + $0xc0] sm:$0xff]  ;;  %v579_v13 = vld [vmem:[%s3641_s3 + $0xe8] sm:$0xff]  ;;  %v584_v47 = vld [vmem:[%s3641_s3 + $0x110] sm:$0xff] }
 0x154   :  { %3898 = vst [vmem:[#allocation176_spill] sm:$0xff] %v2997_v15  ;;  %v548_v25 = vsel %vm545_vm4, %v547_v11, %v543_v32  ;;  %v594_v11 = vld [vmem:[%s3641_s3 + $0x160] sm:$0xff]  ;;  %v609_v33 = vld [vmem:[%s3641_s3 + $0x1d8] sm:$0xff]  ;;  %v619_v32 = vld [vmem:[%s3641_s3 + $0x228] sm:$0xff] }
 0x155   :  { %3899 = vst [vmem:[#allocation177_spill] sm:$0xff] %v2999_v39  ;;  %v639_v7 = vperm.slane %v548_v25, 0  ;;  %v614_v17 = vld [vmem:[%s3641_s3 + $0x200] sm:$0xff]  ;;  %v624_v25 = vld [vmem:[%s3641_s3 + $0x250] sm:$0xff] }
 0x156   :  { %3900 = vst [vmem:[#allocation178_spill] sm:$0xff] %v3001_v5 }
 0x157   :  { %3901 = vst [vmem:[#allocation179_spill] sm:$0xff] %v3003_v1  ;;  %v3085_v1 = vmul.f32 %v639_v7, %v579_v13  ;;  %v3087_v5 = vmul.f32 %v639_v7, %v584_v47  ;;  %v3089_v39 = vmul.f32 %v639_v7, %v589_v0  ;;  %v3099_v15 = vmul.f32 %v639_v7, %v614_v17 }
 0x158   :  { %3902 = vst [vmem:[#allocation180_spill] sm:$0xff] %v3005_v53  ;;  %v3083_v53 = vmul.f32 %v639_v7, %v574_v41  ;;  %v3101_v31 = vmul.f32 %v639_v7, %v619_v32  ;;  %v3103_v41 = vmul.f32 %v639_v7, %v624_v25 }
 0x159   :  { %3903 = vst [vmem:[#allocation181_spill] sm:$0xff] %v3007_v35  ;;  %v634_v35 = vld [vmem:[%s3641_s3 + $0x2a0] sm:$0xff] }
 0x15a   :  { %3904 = vst [vmem:[#allocation182_spill] sm:$0xff] %v3009_v27  ;;  %v3078_v27 = vmul.f32 %v639_v7, %v569_v21  ;;  %v3097_v21 = vmul.f32 %v639_v7, %v609_v33  ;;  %v3107_v47 = vmul.f32 %v639_v7, %v634_v35 }
 0x15b   :  { %3905 = vst [vmem:[#allocation183_spill] sm:$0xff] %v3011_v29  ;;  %v3076_v29 = vmul.f32 %v639_v7, %v564_v9  ;;  %v3095_v9 = vmul.f32 %v639_v7, %v604_v59 }
 0x15c   :  { %3906 = vst [vmem:[#allocation184_spill] sm:$0xff] %v3013_v45  ;;  %v3074_v45 = vmul.f32 %v639_v7, %v559_v43  ;;  %v3093_v43 = vmul.f32 %v639_v7, %v599_v37 }
 0x15d   :  { %3907 = vst [vmem:[#allocation185_spill] sm:$0xff] %v3015_v57  ;;  %v3072_v57 = vmul.f32 %v639_v7, %v554_v23  ;;  %v3091_v23 = vmul.f32 %v639_v7, %v594_v11 }
 0x15e   :  { %3908 = vst [vmem:[#allocation186_spill] sm:$0xff] %v3024_v55  ;;  %v629_v55 = vld [vmem:[%s3641_s3 + $0x278] sm:$0xff] }
 0x15f   :  { %3909 = vst [vmem:[#allocation187_spill] sm:$0xff] %v3089_v39  ;;  %v3105_v13 = vmul.f32 %v639_v7, %v629_v55 }
 0x160   :  { %3910 = vst [vmem:[#allocation188_spill] sm:$0xff] %v3091_v23 }
 0x161   :  { %3911 = vst [vmem:[#allocation189_spill] sm:$0xff] %v3093_v43 }
 0x162   :  { %3912 = vst [vmem:[#allocation190_spill] sm:$0xff] %v3095_v9 }
 0x163   :  { %3913 = vst [vmem:[#allocation191_spill] sm:$0xff] %v3097_v21 }
 0x164   :  { %3914 = vst [vmem:[#allocation192_spill] sm:$0xff] %v3099_v15 }
 0x165   :  { %3915 = vst [vmem:[#allocation193_spill] sm:$0xff] %v3101_v31 }
 0x166   :  { %3916 = vst [vmem:[#allocation194_spill] sm:$0xff] %v3103_v41 }
 0x167   :  { %3917 = vst [vmem:[#allocation195_spill] sm:$0xff] %v3105_v13 }
 0x168   :  { %1787 = dma.done.wait [#allocation3], 18432 }
 0x169   :  { %1788 = vsyncadd [#allocation3], 4294948864  ;;  %1724 = vmatpush.msrb.mxu2 %v2137_v62  ;;  %993 = vmatpush.msra.mxu0 %v2137_v62  ;;  %v3932_v30 = vld [vmem:[#allocation123_spill] sm:$0xff]  ;;  %v3947_v62 = vld [vmem:[#allocation124_spill] sm:$0xff]  ;;  %vm873_vm5 = vcmask 523264   ;;  %vm1606_vm6 = vcmask 556032  }
 0x16a   :  { %926 = vmatpush.msrb.mxu1 %v1967_v28  ;;  %1709 = vmatpush.msrb.mxu3 %v1967_v28  ;;  %v3931_v28 = vld [vmem:[#allocation103_spill] sm:$0xff]  ;;  %v3948_v35 = vld [vmem:[#allocation61_spill] sm:$0xff]  ;;  %v3953_v7 = vld [vmem:[#allocation18_spill] sm:$0xff]  ;;  %s1791_s3 = smov [#allocation4]   ;;  %s1646_s12 = sshll.u32 %s3643_s5, 4  ;;  %s1647_s12 = int_to_ptr.hbm [resolvable:$true] %s1646_s12 }
 0x16b   :  { %1725 = vmatpush.msrb.mxu2 %v2127_v60  ;;  %994 = vmatpush.msra.mxu0 %v2127_v60  ;;  %v3946_v60 = vld [vmem:[#allocation19_spill] sm:$0xff]  ;;  %v3949_v55 = vld [vmem:[#allocation133_spill] sm:$0xff]  ;;  %s1644_s10 = sshll.u32 %s1791_s3, 4  ;;  %s1792_s1 = smov 256   ;;  %s1645_s10 = int_to_ptr.vmem [resolvable:$true] %s1644_s10 }
 0x16c   :  { %927 = vmatpush.msrb.mxu1 %v1957_v26  ;;  %1710 = vmatpush.msrb.mxu3 %v1957_v26  ;;  %v3930_v26 = vld [vmem:[#allocation69_spill] sm:$0xff]  ;;  %v3951_v11 = vld [vmem:[#allocation59_spill] sm:$0xff]  ;;  %s1793_s2 = smov 16  }
 0x16d   :  { %1726 = vmatpush.msrb.mxu2 %v2117_v58  ;;  %995 = vmatpush.msra.mxu0 %v2117_v58  ;;  %v3945_v58 = vld [vmem:[#allocation97_spill] sm:$0xff]  ;;  %v3952_v37 = vld [vmem:[#allocation95_spill] sm:$0xff] }
 0x16e   :  { %928 = vmatpush.msrb.mxu1 %v1947_v24  ;;  %1711 = vmatpush.msrb.mxu3 %v1947_v24  ;;  %v3929_v24 = vld [vmem:[#allocation119_spill] sm:$0xff]  ;;  %v3950_v0 = vld [vmem:[#allocation149_spill] sm:$0xff] }
 0x16f   :  { %1727 = vmatpush.msrb.mxu2 %v2107_v56  ;;  %996 = vmatpush.msra.mxu0 %v2107_v56  ;;  %v3944_v56 = vld [vmem:[#allocation115_spill] sm:$0xff]  ;;  %v3954_v59 = vld [vmem:[#allocation113_spill] sm:$0xff] }
 0x170   :  { %929 = vmatpush.msrb.mxu1 %v1937_v22  ;;  %1712 = vmatpush.msrb.mxu3 %v1937_v22  ;;  %v3928_v22 = vld [vmem:[#allocation23_spill] sm:$0xff]  ;;  %v3955_v33 = vld [vmem:[#allocation141_spill] sm:$0xff] }
 0x171   :  { %1728 = vmatpush.msrb.mxu2 %v2097_v54  ;;  %997 = vmatpush.msra.mxu0 %v2097_v54  ;;  %v3943_v54 = vld [vmem:[#allocation63_spill] sm:$0xff]  ;;  %v3956_v17 = vld [vmem:[#allocation57_spill] sm:$0xff] }
 0x172   :  { %930 = vmatpush.msrb.mxu1 %v1927_v20  ;;  %1713 = vmatpush.msrb.mxu3 %v1927_v20  ;;  %v3927_v20 = vld [vmem:[#allocation105_spill] sm:$0xff] }
 0x173   :  { %1729 = vmatpush.msrb.mxu2 %v2087_v52  ;;  %998 = vmatpush.msra.mxu0 %v2087_v52  ;;  %v3942_v52 = vld [vmem:[#allocation20_spill] sm:$0xff]  ;;  %v3957_v32 = vld [vmem:[#allocation93_spill] sm:$0xff] }
 0x174   :  { %931 = vmatpush.msrb.mxu1 %v1917_v18  ;;  %1714 = vmatpush.msrb.mxu3 %v1917_v18  ;;  %v3926_v18 = vld [vmem:[#allocation71_spill] sm:$0xff]  ;;  %v3958_v25 = vld [vmem:[#allocation17_spill] sm:$0xff] }
 0x175   :  { %1730 = vmatpush.msrb.mxu2 %v2077_v50  ;;  %999 = vmatpush.msra.mxu0 %v2077_v50  ;;  %v3941_v50 = vld [vmem:[#allocation99_spill] sm:$0xff] }
 0x176   :  { %932 = vmatpush.msrb.mxu1 %v1907_v16  ;;  %1715 = vmatpush.msrb.mxu3 %v1907_v16  ;;  %v3925_v16 = vld [vmem:[#allocation24_spill] sm:$0xff] }
 0x177   :  { %1731 = vmatpush.msrb.mxu2 %v2067_v48  ;;  %1000 = vmatpush.msra.mxu0 %v2067_v48  ;;  %v3940_v48 = vld [vmem:[#allocation65_spill] sm:$0xff] }
 0x178   :  { %933 = vmatpush.msrb.mxu1 %v1897_v14  ;;  %1716 = vmatpush.msrb.mxu3 %v1897_v14  ;;  %v3924_v14 = vld [vmem:[#allocation139_spill] sm:$0xff] }
 0x179   :  { %1732 = vmatpush.msrb.mxu2 %v2057_v46  ;;  %1001 = vmatpush.msra.mxu0 %v2057_v46  ;;  %v3939_v46 = vld [vmem:[#allocation140_spill] sm:$0xff] }
 0x17a   :  { %934 = vmatpush.msrb.mxu1 %v1887_v12  ;;  %1717 = vmatpush.msrb.mxu3 %v1887_v12  ;;  %v3922_v12 = vld [vmem:[#allocation73_spill] sm:$0xff] }
 0x17b   :  { %1733 = vmatpush.msrb.mxu2 %v2047_v44  ;;  %1002 = vmatpush.msra.mxu0 %v2047_v44  ;;  %v3938_v44 = vld [vmem:[#allocation117_spill] sm:$0xff] }
 0x17c   :  { %935 = vmatpush.msrb.mxu1 %v1877_v10  ;;  %1718 = vmatpush.msrb.mxu3 %v1877_v10  ;;  %v3921_v10 = vld [vmem:[#allocation25_spill] sm:$0xff] }
 0x17d   :  { %1734 = vmatpush.msrb.mxu2 %v2037_v42  ;;  %1003 = vmatpush.msra.mxu0 %v2037_v42  ;;  %v3937_v42 = vld [vmem:[#allocation21_spill] sm:$0xff] }
 0x17e   :  { %936 = vmatpush.msrb.mxu1 %v1867_v8  ;;  %1719 = vmatpush.msrb.mxu3 %v1867_v8  ;;  %v3919_v8 = vld [vmem:[#allocation26_spill] sm:$0xff] }
 0x17f   :  { %1735 = vmatpush.msrb.mxu2 %v2027_v40  ;;  %1004 = vmatpush.msra.mxu0 %v2027_v40  ;;  %v3936_v40 = vld [vmem:[#allocation101_spill] sm:$0xff] }
 0x180   :  { %937 = vmatpush.msrb.mxu1 %v1857_v6  ;;  %1720 = vmatpush.msrb.mxu3 %v1857_v6  ;;  %v3918_v6 = vld [vmem:[#allocation9_spill] sm:$0xff] }
 0x181   :  { %1736 = vmatpush.msrb.mxu2 %v2017_v38  ;;  %1005 = vmatpush.msra.mxu0 %v2017_v38  ;;  %v3935_v38 = vld [vmem:[#allocation67_spill] sm:$0xff] }
 0x182   :  { %938 = vmatpush.msrb.mxu1 %v1847_v4  ;;  %1721 = vmatpush.msrb.mxu3 %v1847_v4  ;;  %v3920_v4 = vld [vmem:[#allocation131_spill] sm:$0xff] }
 0x183   :  { %1737 = vmatpush.msrb.mxu2 %v2007_v36  ;;  %1006 = vmatpush.msra.mxu0 %v2007_v36  ;;  %v3934_v36 = vld [vmem:[#allocation132_spill] sm:$0xff] }
 0x184   :  { %939 = vmatpush.msrb.mxu1 %v1837_v2  ;;  %1722 = vmatpush.msrb.mxu3 %v1837_v2  ;;  %v3923_v2 = vld [vmem:[#allocation121_spill] sm:$0xff] }
 0x185   :  { %1738 = vmatpush.msrb.mxu2 %v1997_v34  ;;  %1007 = vmatpush.msra.mxu0 %v1997_v34  ;;  %v3933_v34 = vld [vmem:[#allocation22_spill] sm:$0xff] }
 0x186   :  { %940 = vmatpush.msrb.mxu1 %v3918_v6  ;;  %1723 = vmatpush.msrb.mxu3 %v3918_v6  ;;  %v3959_v6 = vld [vmem:[#allocation55_spill] sm:$0xff] }
 0x187   :  { %1739 = vmatpush.msrb.mxu2 %v3919_v8  ;;  %941 = vmatmul.f32.vlgmr.msrb.gmra.mxu1 %v2698_v51 }
 0x188   :  { %968 = vmatmul.f32.vlgmr.msrb.gmra.mxu3 %v3920_v4  ;;  %1033 = vmatmul.f32.vlgmr.msrb.gmra.mxu2 %v2803_v19 }
 0x189   :  { %1265 = vmatpush.msra.mxu2 %v3921_v10  ;;  %1061 = vmatpush.msra.mxu3 %v3922_v12  ;;  %v3961_v10 = vld [vmem:[#allocation91_spill] sm:$0xff]  ;;  %v3962_v12 = vld [vmem:[#allocation16_spill] sm:$0xff] }
 0x18a   :  { %1008 = vmatpush.msra.mxu0 %v3919_v8  ;;  %1205 = vmatpush.msra.mxu1 %v3923_v2  ;;  %v3960_v8 = vld [vmem:[#allocation111_spill] sm:$0xff]  ;;  %v3963_v2 = vld [vmem:[#allocation125_spill] sm:$0xff] }
 0x18b   :  { %1009 = vmatmul.f32.vlgmr.msra.gmra.mxu0 %v3924_v14  ;;  %1266 = vmatpush.msra.mxu2 %v3925_v16  ;;  %v3964_v16 = vld [vmem:[#allocation53_spill] sm:$0xff] }
 0x18c   :  { %1062 = vmatpush.msra.mxu3 %v3926_v18  ;;  %1129 = vmatpush.msrb.mxu0 %v3927_v20  ;;  %v3965_v18 = vld [vmem:[#allocation134_spill] sm:$0xff] }
 0x18d   :  { %1267 = vmatpush.msra.mxu2 %v3928_v22  ;;  %1206 = vmatpush.msra.mxu1 %v3929_v24  ;;  %v3966_v20 = vld [vmem:[#allocation150_spill] sm:$0xff]  ;;  %v3967_v22 = vld [vmem:[#allocation89_spill] sm:$0xff]  ;;  %v3968_v24 = vld [vmem:[#allocation15_spill] sm:$0xff] }
 0x18e   :  { %1063 = vmatpush.msra.mxu3 %v3930_v26  ;;  %1130 = vmatpush.msrb.mxu0 %v3931_v28  ;;  %v3969_v26 = vld [vmem:[#allocation51_spill] sm:$0xff]  ;;  %v3970_v28 = vld [vmem:[#allocation109_spill] sm:$0xff] }
 0x18f   :  { %944 = vmatmul.f32.gmra.mxu1 %v3932_v30  ;;  %1268 = vmatpush.msra.mxu2 %v3933_v34  ;;  %v3971_v34 = vld [vmem:[#allocation142_spill] sm:$0xff] }
 0x190   :  { %971 = vmatmul.f32.gmra.mxu3 %v3934_v36  ;;  %1036 = vmatmul.f32.gmra.mxu2 %v2805_v61 }
 0x191   :  { %1064 = vmatpush.msra.mxu3 %v3935_v38  ;;  %1131 = vmatpush.msrb.mxu0 %v3936_v40  ;;  %v3972_v38 = vld [vmem:[#allocation14_spill] sm:$0xff]  ;;  %v3973_v40 = vld [vmem:[#allocation87_spill] sm:$0xff] }
 0x192   :  { %1269 = vmatpush.msra.mxu2 %v3937_v42  ;;  %1207 = vmatpush.msra.mxu1 %v3938_v44  ;;  %v3974_v42 = vld [vmem:[#allocation49_spill] sm:$0xff] }
 0x193   :  { %1012 = vmatmul.f32.gmra.mxu0 %v3939_v46  ;;  %1065 = vmatpush.msra.mxu3 %v3940_v48  ;;  %v3975_v44 = vld [vmem:[#allocation13_spill] sm:$0xff]  ;;  %v3976_v48 = vld [vmem:[#allocation107_spill] sm:$0xff] }
 0x194   :  { %1132 = vmatpush.msrb.mxu0 %v3941_v50  ;;  %1270 = vmatpush.msra.mxu2 %v3942_v52  ;;  %v3977_v50 = vld [vmem:[#allocation85_spill] sm:$0xff]  ;;  %v3978_v52 = vld [vmem:[#allocation47_spill] sm:$0xff] }
 0x195   :  { %1066 = vmatpush.msra.mxu3 %v3943_v54  ;;  %1208 = vmatpush.msra.mxu1 %v3944_v56  ;;  %v3979_v54 = vld [vmem:[#allocation126_spill] sm:$0xff]  ;;  %v3980_v56 = vld [vmem:[#allocation12_spill] sm:$0xff] }
 0x196   :  { %1133 = vmatpush.msrb.mxu0 %v3945_v58  ;;  %1271 = vmatpush.msra.mxu2 %v3946_v60  ;;  %v3981_v58 = vld [vmem:[#allocation135_spill] sm:$0xff] }
 0x197   :  { %947 = vmatmul.f32.gmra.mxu1 %v3947_v62  ;;  %1067 = vmatpush.msra.mxu3 %v3948_v35  ;;  %v3982_v60 = vld [vmem:[#allocation151_spill] sm:$0xff] }
 0x198   :  { %974 = vmatmul.f32.gmra.mxu3 %v3949_v55  ;;  %1039 = vmatmul.f32.gmra.mxu2 %v3950_v0  ;;  %v3983_v35 = vld [vmem:[#allocation83_spill] sm:$0xff] }
 0x199   :  { %1068 = vmatpush.msra.mxu3 %v3951_v11  ;;  %1134 = vmatpush.msrb.mxu0 %v3952_v37  ;;  %v3984_v11 = vld [vmem:[#allocation45_spill] sm:$0xff]  ;;  %v3985_v37 = vld [vmem:[#allocation11_spill] sm:$0xff] }
 0x19a   :  { %1272 = vmatpush.msra.mxu2 %v3953_v7  ;;  %1209 = vmatpush.msra.mxu1 %v3954_v59  ;;  %v3986_v7 = vld [vmem:[#allocation106_spill] sm:$0xff]  ;;  %v3987_v59 = vld [vmem:[#allocation143_spill] sm:$0xff] }
 0x19b   :  { %1015 = vmatmul.f32.gmra.mxu0 %v3955_v33  ;;  %1069 = vmatpush.msra.mxu3 %v3956_v17  ;;  %v3988_v17 = vld [vmem:[#allocation43_spill] sm:$0xff] }
 0x19c   :  { %1135 = vmatpush.msrb.mxu0 %v3957_v32  ;;  %1273 = vmatpush.msra.mxu2 %v3958_v25  ;;  %v3989_v32 = vld [vmem:[#allocation81_spill] sm:$0xff]  ;;  %v3990_v25 = vld [vmem:[#allocation42_spill] sm:$0xff]  ;;  %v4079_v0 = vld [vmem:[#allocation179_spill] sm:$0xff] }
 0x19d   :  { %1070 = vmatpush.msra.mxu3 %v3959_v6  ;;  %1210 = vmatpush.msra.mxu1 %v3960_v8  ;;  %v3991_v6 = vld [vmem:[#allocation10_spill] sm:$0xff]  ;;  %v3992_v8 = vld [vmem:[#allocation104_spill] sm:$0xff] }
 0x19e   :  { %1136 = vmatpush.msrb.mxu0 %v3961_v10  ;;  %1274 = vmatpush.msra.mxu2 %v3962_v12  ;;  %v3993_v10 = vld [vmem:[#allocation79_spill] sm:$0xff]  ;;  %v3994_v12 = vld [vmem:[#allocation122_spill] sm:$0xff] }
 0x19f   :  { %950 = vmatmul.f32.gmra.mxu1 %v3963_v2  ;;  %1071 = vmatpush.msra.mxu3 %v3964_v16  ;;  %v3995_v16 = vld [vmem:[#allocation127_spill] sm:$0xff] }
 0x1a0   :  { %977 = vmatmul.f32.gmra.mxu3 %v3965_v18  ;;  %1042 = vmatmul.f32.gmra.mxu2 %v3966_v20 }
 0x1a1   :  { %1137 = vmatpush.msrb.mxu0 %v3967_v22  ;;  %1275 = vmatpush.msra.mxu2 %v3968_v24  ;;  %v3996_v22 = vld [vmem:[#allocation41_spill] sm:$0xff]  ;;  %v3997_v24 = vld [vmem:[#allocation136_spill] sm:$0xff] }
 0x1a2   :  { %1072 = vmatpush.msra.mxu3 %v3969_v26  ;;  %1211 = vmatpush.msra.mxu1 %v3970_v28  ;;  %v3998_v26 = vld [vmem:[#allocation152_spill] sm:$0xff]  ;;  %v3999_v28 = vld [vmem:[#allocation77_spill] sm:$0xff] }
 0x1a3   :  { %1018 = vmatmul.f32.gmra.mxu0 %v3971_v34  ;;  %1276 = vmatpush.msra.mxu2 %v3972_v38  ;;  %v4000_v38 = vld [vmem:[#allocation40_spill] sm:$0xff] }
 0x1a4   :  { %1138 = vmatpush.msrb.mxu0 %v3973_v40  ;;  %1073 = vmatpush.msra.mxu3 %v3974_v42  ;;  %v4001_v40 = vld [vmem:[#allocation120_spill] sm:$0xff]  ;;  %v4002_v42 = vld [vmem:[#allocation102_spill] sm:$0xff] }
 0x1a5   :  { %1277 = vmatpush.msra.mxu2 %v3975_v44  ;;  %1212 = vmatpush.msra.mxu1 %v3976_v48  ;;  %v4003_v44 = vld [vmem:[#allocation144_spill] sm:$0xff]  ;;  %v4004_v48 = vld [vmem:[#allocation39_spill] sm:$0xff] }
 0x1a6   :  { %1139 = vmatpush.msrb.mxu0 %v3977_v50  ;;  %1074 = vmatpush.msra.mxu3 %v3978_v52  ;;  %v4005_v50 = vld [vmem:[#allocation75_spill] sm:$0xff]  ;;  %v4006_v52 = vld [vmem:[#allocation100_spill] sm:$0xff] }
 0x1a7   :  { %953 = vmatmul.f32.gmra.mxu1 %v3979_v54  ;;  %1278 = vmatpush.msra.mxu2 %v3980_v56  ;;  %v4007_v56 = vld [vmem:[#allocation74_spill] sm:$0xff] }
 0x1a8   :  { %980 = vmatmul.f32.gmra.mxu3 %v3981_v58  ;;  %1045 = vmatmul.f32.gmra.mxu2 %v3982_v60 }
 0x1a9   :  { %1140 = vmatpush.msrb.mxu0 %v3983_v35  ;;  %1075 = vmatpush.msra.mxu3 %v3984_v11  ;;  %v4008_v35 = vld [vmem:[#allocation38_spill] sm:$0xff] }
 0x1aa   :  { %1279 = vmatpush.msra.mxu2 %v3985_v37  ;;  %1469 = vmatpush.msrb.mxu1 %v3986_v7  ;;  %v4009_v11 = vld [vmem:[#allocation118_spill] sm:$0xff]  ;;  %v4011_v7 = vld [vmem:[#allocation128_spill] sm:$0xff] }
 0x1ab   :  { %1021 = vmatmul.f32.gmra.mxu0 %v3987_v59  ;;  %1076 = vmatpush.msra.mxu3 %v3988_v17  ;;  %v4010_v37 = vld [vmem:[#allocation98_spill] sm:$0xff]  ;;  %v4012_v17 = vld [vmem:[#allocation72_spill] sm:$0xff] }
 0x1ac   :  { %1141 = vmatpush.msrb.mxu0 %v3989_v32  ;;  %1280 = vmatpush.msra.mxu2 %v3991_v6  ;;  %v4013_v32 = vld [vmem:[#allocation137_spill] sm:$0xff]  ;;  %v4015_v6 = vld [vmem:[#allocation70_spill] sm:$0xff] }
 0x1ad   :  { %1333 = vmatpush.msrb.mxu3 %v3990_v25  ;;  %1470 = vmatpush.msrb.mxu1 %v3992_v8  ;;  %v4014_v25 = vld [vmem:[#allocation153_spill] sm:$0xff] }
 0x1ae   :  { %1142 = vmatpush.msrb.mxu0 %v3993_v10  ;;  %1545 = vmatpush.msrb.mxu2 %v3994_v12  ;;  %v4016_v8 = vld [vmem:[#allocation37_spill] sm:$0xff]  ;;  %v4017_v10 = vld [vmem:[#allocation96_spill] sm:$0xff] }
 0x1af   :  { %956 = vmatmul.f32.gmra.mxu1 %v3995_v16  ;;  %1334 = vmatpush.msrb.mxu3 %v3996_v22  ;;  %v4018_v12 = vld [vmem:[#allocation116_spill] sm:$0xff]  ;;  %v4019_v22 = vld [vmem:[#allocation145_spill] sm:$0xff] }
 0x1b0   :  { %983 = vmatmul.f32.gmra.mxu3 %v3997_v24  ;;  %1048 = vmatmul.f32.gmra.mxu2 %v3998_v26 }
 0x1b1   :  { %1143 = vmatpush.msrb.mxu0 %v3999_v28  ;;  %1335 = vmatpush.msrb.mxu3 %v4000_v38  ;;  %v4020_v28 = vld [vmem:[#allocation36_spill] sm:$0xff] }
 0x1b2   :  { %1546 = vmatpush.msrb.mxu2 %v4001_v40  ;;  %1471 = vmatpush.msrb.mxu1 %v4002_v42  ;;  %v4021_v38 = vld [vmem:[#allocation68_spill] sm:$0xff]  ;;  %v4022_v40 = vld [vmem:[#allocation94_spill] sm:$0xff]  ;;  %v4023_v42 = vld [vmem:[#allocation35_spill] sm:$0xff] }
 0x1b3   :  { %1024 = vmatmul.f32.gmra.mxu0 %v4003_v44  ;;  %1336 = vmatpush.msrb.mxu3 %v4004_v48  ;;  %v4024_v48 = vld [vmem:[#allocation114_spill] sm:$0xff] }
 0x1b4   :  { %1144 = vmatpush.msrb.mxu0 %v4005_v50  ;;  %1472 = vmatpush.msrb.mxu1 %v4006_v52  ;;  %v4025_v50 = vld [vmem:[#allocation66_spill] sm:$0xff]  ;;  %v4026_v52 = vld [vmem:[#allocation92_spill] sm:$0xff] }
 0x1b5   :  { %1337 = vmatpush.msrb.mxu3 %v4008_v35  ;;  %1547 = vmatpush.msrb.mxu2 %v4009_v11  ;;  %v4028_v35 = vld [vmem:[#allocation34_spill] sm:$0xff] }
 0x1b6   :  { %1401 = vmatpush.msra.mxu0 %v4007_v56  ;;  %1473 = vmatpush.msrb.mxu1 %v4010_v37  ;;  %v4027_v56 = vld [vmem:[#allocation129_spill] sm:$0xff]  ;;  %v4029_v11 = vld [vmem:[#allocation138_spill] sm:$0xff] }
 0x1b7   :  { %959 = vmatmul.f32.gmra.mxu1 %v4011_v7  ;;  %1338 = vmatpush.msrb.mxu3 %v4016_v8  ;;  %v4030_v37 = vld [vmem:[#allocation154_spill] sm:$0xff] }
 0x1b8   :  { %1402 = vmatpush.msra.mxu0 %v4012_v17  ;;  %986 = vmatmul.f32.gmra.mxu3 %v4013_v32  ;;  %v4031_v17 = vld [vmem:[#allocation64_spill] sm:$0xff]  ;;  %v4033_v8 = vld [vmem:[#allocation90_spill] sm:$0xff] }
 0x1b9   :  { %1051 = vmatmul.f32.gmra.mxu2 %v4014_v25  ;;  %1474 = vmatpush.msrb.mxu1 %v4017_v10  ;;  %v4034_v10 = vld [vmem:[#allocation112_spill] sm:$0xff]  ;;  %v4077_v25 = vld [vmem:[#allocation178_spill] sm:$0xff] }
 0x1ba   :  { %1403 = vmatpush.msra.mxu0 %v4015_v6  ;;  %1548 = vmatpush.msrb.mxu2 %v4018_v12  ;;  %v4032_v6 = vld [vmem:[#allocation33_spill] sm:$0xff]  ;;  %v4035_v12 = vld [vmem:[#allocation146_spill] sm:$0xff] }
 0x1bb   :  { %1027 = vmatmul.f32.gmra.mxu0 %v4019_v22  ;;  %1339 = vmatpush.msrb.mxu3 %v4020_v28  ;;  %v4036_v28 = vld [vmem:[#allocation32_spill] sm:$0xff] }
 0x1bc   :  { %1404 = vmatpush.msra.mxu0 %v4021_v38  ;;  %1475 = vmatpush.msrb.mxu1 %v4022_v40  ;;  %v4037_v38 = vld [vmem:[#allocation62_spill] sm:$0xff]  ;;  %v4038_v40 = vld [vmem:[#allocation88_spill] sm:$0xff] }
 0x1bd   :  { %1340 = vmatpush.msrb.mxu3 %v4023_v42  ;;  %1549 = vmatpush.msrb.mxu2 %v4024_v48  ;;  %v4039_v42 = vld [vmem:[#allocation31_spill] sm:$0xff]  ;;  %v4040_v48 = vld [vmem:[#allocation110_spill] sm:$0xff] }
 0x1be   :  { %1405 = vmatpush.msra.mxu0 %v4025_v50  ;;  %1476 = vmatpush.msrb.mxu1 %v4026_v52  ;;  %v4041_v50 = vld [vmem:[#allocation60_spill] sm:$0xff]  ;;  %v4042_v52 = vld [vmem:[#allocation86_spill] sm:$0xff] }
 0x1bf   :  { %962 = vmatmul.f32.gmra.mxu1 %v4027_v56  ;;  %1341 = vmatpush.msrb.mxu3 %v4028_v35  ;;  %v4043_v35 = vld [vmem:[#allocation130_spill] sm:$0xff] }
 0x1c0   :  { %989 = vmatmul.f32.gmra.mxu3 %v4029_v11  ;;  %1406 = vmatpush.msra.mxu0 %v4031_v17  ;;  %v4044_v17 = vld [vmem:[#allocation30_spill] sm:$0xff] }
 0x1c1   :  { %1054 = vmatmul.f32.gmra.mxu2 %v4030_v37  ;;  %1342 = vmatpush.msrb.mxu3 %v4032_v6  ;;  %v4045_v6 = vld [vmem:[#allocation155_spill] sm:$0xff] }
 0x1c2   :  { %1477 = vmatpush.msrb.mxu1 %v4033_v8  ;;  %1550 = vmatpush.msrb.mxu2 %v4034_v10  ;;  %v4046_v8 = vld [vmem:[#allocation156_spill] sm:$0xff]  ;;  %v4047_v10 = vld [vmem:[#allocation58_spill] sm:$0xff] }
 0x1c3   :  { %1030 = vmatmul.f32.gmra.mxu0 %v4035_v12  ;;  %1343 = vmatpush.msrb.mxu3 %v4036_v28  ;;  %v4048_v28 = vld [vmem:[#allocation84_spill] sm:$0xff] }
 0x1c4   :  { %1407 = vmatpush.msra.mxu0 %v4037_v38  ;;  %1478 = vmatpush.msrb.mxu1 %v4038_v40  ;;  %v4049_v38 = vld [vmem:[#allocation29_spill] sm:$0xff]  ;;  %v4050_v40 = vld [vmem:[#allocation108_spill] sm:$0xff] }
 0x1c5   :  { %1344 = vmatpush.msrb.mxu3 %v4039_v42  ;;  %1551 = vmatpush.msrb.mxu2 %v4040_v48  ;;  %v4051_v42 = vld [vmem:[#allocation82_spill] sm:$0xff]  ;;  %v4052_v48 = vld [vmem:[#allocation56_spill] sm:$0xff] }
 0x1c6   :  { %1408 = vmatpush.msra.mxu0 %v4041_v50  ;;  %1479 = vmatpush.msrb.mxu1 %v4042_v52  ;;  %v4053_v50 = vld [vmem:[#allocation28_spill] sm:$0xff] }
 0x1c7   :  { %965 = vmatmul.f32.gmra.mxu1 %v4043_v35  ;;  %1345 = vmatpush.msrb.mxu3 %v4044_v17  ;;  %v4054_v52 = vld [vmem:[#allocation80_spill] sm:$0xff]  ;;  %v4055_v17 = vld [vmem:[#allocation54_spill] sm:$0xff] }
 0x1c8   :  { %1077 = vmatmul.f32.vlgmr.msra.gmra.mxu3 %v4046_v8  ;;  %1409 = vmatpush.msra.mxu0 %v4047_v10  ;;  %v4056_v10 = vld [vmem:[#allocation27_spill] sm:$0xff] }
 0x1c9   :  { %1057 = vmatmul.f32.gmra.mxu2 %v4045_v6  ;;  %1480 = vmatpush.msrb.mxu1 %v4048_v28  ;;  %v4057_v28 = vld [vmem:[#allocation157_spill] sm:$0xff] }
 0x1ca   :  { %1346 = vmatpush.msrb.mxu3 %v4049_v38  ;;  %1552 = vmatpush.msrb.mxu2 %v4050_v40  ;;  %v4058_v38 = vld [vmem:[#allocation52_spill] sm:$0xff]  ;;  %v4059_v40 = vld [vmem:[#allocation78_spill] sm:$0xff] }
 0x1cb   :  { %1145 = vmatmul.f32.vlgmr.msrb.gmra.mxu0 %v2982_v63  ;;  %1481 = vmatpush.msrb.mxu1 %v4051_v42  ;;  %v4060_v42 = vld [vmem:[#allocation76_spill] sm:$0xff] }
 0x1cc   :  { %1410 = vmatpush.msra.mxu0 %v4052_v48  ;;  %1347 = vmatpush.msrb.mxu3 %v4053_v50  ;;  %v4061_v48 = vld [vmem:[#allocation50_spill] sm:$0xff]  ;;  %v4062_v50 = vld [vmem:[#allocation48_spill] sm:$0xff] }
 0x1cd   :  { %1482 = vmatpush.msrb.mxu1 %v4054_v52  ;;  %v4063_v52 = vld [vmem:[#allocation158_spill] sm:$0xff] }
 0x1ce   :  { %1411 = vmatpush.msra.mxu0 %v4055_v17  ;;  %1348 = vmatpush.msrb.mxu3 %v4056_v10  ;;  %v4065_v17 = vld [vmem:[#allocation173_spill] sm:$0xff]  ;;  %v4066_v10 = vld [vmem:[#allocation44_spill] sm:$0xff] }
 0x1cf   :  { %1673 = vmatmul.msk.f32.vlgmr.msra.gmra.mxu1 %vm873_vm5, %v3072_v57 }
 0x1d0   :  { %1080 = vmatmul.f32.gmra.mxu3 %v4057_v28  ;;  %1412 = vmatpush.msra.mxu0 %v4058_v38  ;;  %v4067_v38 = vld [vmem:[#allocation159_spill] sm:$0xff] }
 0x1d1   :  { %1281 = vmatmul.f32.vlgmr.msra.gmra.mxu2 %v2698_v51  ;;  %1483 = vmatpush.msrb.mxu1 %v4059_v40  ;;  %v4064_v51 = vld [vmem:[#allocation46_spill] sm:$0xff] }
 0x1d2   :  { %1413 = vmatpush.msra.mxu0 %v4061_v48  ;;  %v4068_v40 = vld [vmem:[#allocation174_spill] sm:$0xff]  ;;  %v4071_v48 = vld [vmem:[#allocation175_spill] sm:$0xff] }
 0x1d3   :  { %1148 = vmatmul.f32.gmra.mxu0 %v2984_v49  ;;  %1484 = vmatpush.msrb.mxu1 %v4060_v42  ;;  %v4069_v42 = vld [vmem:[#allocation160_spill] sm:$0xff] }
 0x1d4   :  { %1414 = vmatpush.msra.mxu0 %v4062_v50  ;;  %v4073_v50 = vld [vmem:[#allocation176_spill] sm:$0xff] }
 0x1d6   :  { %1415 = vmatpush.msra.mxu0 %v4064_v51  ;;  %v4075_v51 = vld [vmem:[#allocation177_spill] sm:$0xff] }
 0x1d7   :  { %1674 = vmatmul.msk.f32.gmra.mxu1 %vm873_vm5, %v3074_v45 }
 0x1d8   :  { %1083 = vmatmul.f32.gmra.mxu3 %v4063_v52  ;;  %1416 = vmatpush.msra.mxu0 %v4066_v10  ;;  %v4076_v10 = vld [vmem:[#allocation164_spill] sm:$0xff] }
 0x1d9   :  { %1284 = vmatmul.f32.gmra.mxu2 %v3932_v30  ;;  %v4070_v30 = vld [vmem:[#allocation161_spill] sm:$0xff] }
 0x1db   :  { %1151 = vmatmul.f32.gmra.mxu0 %v4065_v17 }
 0x1df   :  { %1675 = vmatmul.msk.f32.gmra.mxu1 %vm873_vm5, %v3076_v29 }
 0x1e0   :  { %1086 = vmatmul.f32.gmra.mxu3 %v4067_v38 }
 0x1e1   :  { %1287 = vmatmul.f32.gmra.mxu2 %v3947_v62  ;;  %v4072_v62 = vld [vmem:[#allocation162_spill] sm:$0xff] }
 0x1e3   :  { %1154 = vmatmul.f32.gmra.mxu0 %v4068_v40 }
 0x1e7   :  { %1676 = vmatmul.msk.f32.gmra.mxu1 %vm873_vm5, %v3078_v27 }
 0x1e8   :  { %1089 = vmatmul.f32.gmra.mxu3 %v4069_v42 }
 0x1e9   :  { %1290 = vmatmul.f32.gmra.mxu2 %v3963_v2  ;;  %v4074_v2 = vld [vmem:[#allocation163_spill] sm:$0xff] }
 0x1eb   :  { %1157 = vmatmul.f32.gmra.mxu0 %v2993_v3 }
 0x1ef   :  { %1677 = vmatmul.msk.f32.gmra.mxu1 %vm873_vm5, %v3083_v53 }
 0x1f0   :  { %1092 = vmatmul.f32.gmra.mxu3 %v4070_v30 }
 0x1f1   :  { %1293 = vmatmul.f32.gmra.mxu2 %v3979_v54 }
 0x1f3   :  { %1160 = vmatmul.f32.gmra.mxu0 %v4071_v48 }
 0x1f7   :  { %1678 = vmatmul.msk.f32.gmra.mxu1 %vm873_vm5, %v3085_v1 }
 0x1f8   :  { %1095 = vmatmul.f32.gmra.mxu3 %v4072_v62 }
 0x1f9   :  { %1296 = vmatmul.f32.gmra.mxu2 %v3995_v16 }
 0x1fb   :  { %1163 = vmatmul.f32.gmra.mxu0 %v4073_v50 }
 0x1ff   :  { %1679 = vmatmul.msk.f32.gmra.mxu1 %vm873_vm5, %v3087_v5 }
 0x200   :  { %1098 = vmatmul.f32.gmra.mxu3 %v4074_v2 }
 0x201   :  { %1299 = vmatmul.f32.gmra.mxu2 %v4011_v7  ;;  %v4078_v7 = vld [vmem:[#allocation165_spill] sm:$0xff] }
 0x203   :  { %1166 = vmatmul.f32.gmra.mxu0 %v4075_v51 }
 0x204   :  { %v3356_v54 = vpop.f32.mrf.mxu1 }
 0x207   :  { %1680 = vmatmul.msk.f32.gmra.mxu1 %vm873_vm5, %v3089_v39  ;;  %v4082_v39 = vld [vmem:[#allocation180_spill] sm:$0xff] }
 0x208   :  { %1101 = vmatmul.f32.gmra.mxu3 %v4076_v10  ;;  %v3362_v16 = vpop.f32.mrf.mxu0 }
 0x209   :  { %1302 = vmatmul.f32.gmra.mxu2 %v4027_v56 }
 0x20b   :  { %v969_v6 = vpop.f32.mrf.mxu3  ;;  %v3364_v37 = vpop.f32.mrf.mxu2  ;;  %1169 = vmatmul.f32.gmra.mxu0 %v4077_v25  ;;  %v4081_v25 = vld [vmem:[#allocation166_spill] sm:$0xff] }
 0x20c   :  { %v3367_v26 = vpop.f32.mrf.mxu1 }
 0x20f   :  { %1681 = vmatmul.msk.f32.gmra.mxu1 %vm873_vm5, %v3091_v23 }
 0x210   :  { %1104 = vmatmul.f32.gmra.mxu3 %v4078_v7  ;;  %v3373_v60 = vpop.f32.mrf.mxu0 }
 0x211   :  { %1305 = vmatmul.f32.gmra.mxu2 %v4043_v35 }
 0x213   :  { %v972_v20 = vpop.f32.mrf.mxu3  ;;  %v1037_v56 = vpop.f32.mrf.mxu2  ;;  %1172 = vmatmul.f32.gmra.mxu0 %v4079_v0 }
 0x214   :  { %v3376_v61 = vadd.f32 %v1037_v56, %v969_v6  ;;  %v3378_v10 = vpop.f32.mrf.mxu1  ;;  %v4084_v6 = vld [vmem:[#allocation167_spill] sm:$0xff] }
 0x216   :  { %4080 = vst [vmem:[#allocation9_spill] sm:$0xff] %v3376_v61 }
 0x217   :  { %1682 = vmatmul.msk.f32.gmra.mxu1 %vm873_vm5, %v3093_v43  ;;  %v4085_v43 = vld [vmem:[#allocation181_spill] sm:$0xff] }
 0x218   :  { %1107 = vmatmul.f32.gmra.mxu3 %v4081_v25  ;;  %v3384_v7 = vpop.f32.mrf.mxu0 }
 0x219   :  { %1308 = vmatmul.f32.gmra.mxu2 %v3920_v4 }
 0x21b   :  { %v975_v35 = vpop.f32.mrf.mxu3  ;;  %v1040_v23 = vpop.f32.mrf.mxu2  ;;  %1175 = vmatmul.f32.gmra.mxu0 %v4082_v39 }
 0x21c   :  { %v3387_v19 = vadd.f32 %v1040_v23, %v972_v20  ;;  %v3389_v0 = vpop.f32.mrf.mxu1  ;;  %v4087_v23 = vld [vmem:[#allocation168_spill] sm:$0xff] }
 0x21e   :  { %4083 = vst [vmem:[#allocation26_spill] sm:$0xff] %v3387_v19 }
 0x21f   :  { %1683 = vmatmul.msk.f32.gmra.mxu1 %vm873_vm5, %v3095_v9  ;;  %v4088_v9 = vld [vmem:[#allocation182_spill] sm:$0xff] }
 0x220   :  { %1110 = vmatmul.f32.gmra.mxu3 %v4084_v6  ;;  %v3395_v56 = vpop.f32.mrf.mxu0 }
 0x221   :  { %1311 = vmatmul.f32.gmra.mxu2 %v3934_v36 }
 0x223   :  { %v978_v4 = vpop.f32.mrf.mxu3  ;;  %v1043_v25 = vpop.f32.mrf.mxu2  ;;  %1178 = vmatmul.f32.gmra.mxu0 %v4085_v43 }
 0x224   :  { %v3398_v61 = vadd.f32 %v1043_v25, %v975_v35  ;;  %v3400_v39 = vpop.f32.mrf.mxu1  ;;  %v4090_v25 = vld [vmem:[#allocation169_spill] sm:$0xff] }
 0x226   :  { %4086 = vst [vmem:[#allocation131_spill] sm:$0xff] %v3398_v61 }
 0x227   :  { %1684 = vmatmul.msk.f32.gmra.mxu1 %vm873_vm5, %v3097_v21  ;;  %v4091_v21 = vld [vmem:[#allocation183_spill] sm:$0xff] }
 0x228   :  { %1113 = vmatmul.f32.gmra.mxu3 %v4087_v23  ;;  %v3406_v20 = vpop.f32.mrf.mxu0 }
 0x229   :  { %1314 = vmatmul.f32.gmra.mxu2 %v3949_v55 }
 0x22b   :  { %v981_v36 = vpop.f32.mrf.mxu3  ;;  %v1046_v6 = vpop.f32.mrf.mxu2  ;;  %1181 = vmatmul.f32.gmra.mxu0 %v4088_v9 }
 0x22c   :  { %v3409_v19 = vadd.f32 %v1046_v6, %v978_v4  ;;  %v3411_v43 = vpop.f32.mrf.mxu1  ;;  %v4093_v6 = vld [vmem:[#allocation170_spill] sm:$0xff] }
 0x22e   :  { %4089 = vst [vmem:[#allocation25_spill] sm:$0xff] %v3409_v19 }
 0x22f   :  { %1685 = vmatmul.msk.f32.gmra.mxu1 %vm873_vm5, %v3099_v15  ;;  %v4094_v15 = vld [vmem:[#allocation184_spill] sm:$0xff] }
 0x230   :  { %1116 = vmatmul.f32.gmra.mxu3 %v4090_v25  ;;  %v3417_v35 = vpop.f32.mrf.mxu0 }
 0x231   :  { %1317 = vmatmul.f32.gmra.mxu2 %v3965_v18 }
 0x233   :  { %v984_v55 = vpop.f32.mrf.mxu3  ;;  %v1049_v23 = vpop.f32.mrf.mxu2  ;;  %1184 = vmatmul.f32.gmra.mxu0 %v4091_v21 }
 0x234   :  { %v3420_v61 = vadd.f32 %v1049_v23, %v981_v36  ;;  %v3422_v9 = vpop.f32.mrf.mxu1  ;;  %v4096_v23 = vld [vmem:[#allocation171_spill] sm:$0xff] }
 0x236   :  { %4092 = vst [vmem:[#allocation73_spill] sm:$0xff] %v3420_v61 }
 0x237   :  { %1686 = vmatmul.msk.f32.gmra.mxu1 %vm873_vm5, %v3101_v31  ;;  %v4097_v31 = vld [vmem:[#allocation185_spill] sm:$0xff] }
 0x238   :  { %1119 = vmatmul.f32.gmra.mxu3 %v4093_v6  ;;  %v3428_v4 = vpop.f32.mrf.mxu0 }
 0x239   :  { %1320 = vmatmul.f32.gmra.mxu2 %v3981_v58 }
 0x23b   :  { %v987_v18 = vpop.f32.mrf.mxu3  ;;  %1187 = vmatmul.f32.gmra.mxu0 %v4094_v15 }
 0x23c   :  { %v1052_v25 = vpop.f32.mrf.mxu2  ;;  %v3433_v21 = vpop.f32.mrf.mxu1 }
 0x23d   :  { %v3431_v19 = vadd.f32 %v1052_v25, %v984_v55  ;;  %v4098_v55 = vld [vmem:[#allocation172_spill] sm:$0xff] }
 0x23f   :  { %4095 = vst [vmem:[#allocation121_spill] sm:$0xff] %v3431_v19  ;;  %1687 = vmatmul.msk.f32.gmra.mxu1 %vm873_vm5, %v3103_v41 }
 0x240   :  { %1122 = vmatmul.f32.gmra.mxu3 %v4096_v23  ;;  %v3439_v36 = vpop.f32.mrf.mxu0  ;;  %v1011_v23 = vadd.f32 %v3362_v16, %v3356_v54  ;;  %v1014_v54 = vadd.f32 %v3373_v60, %v3367_v26 }
 0x241   :  { %1323 = vmatmul.f32.gmra.mxu2 %v3997_v24 }
 0x243   :  { %v990_v58 = vpop.f32.mrf.mxu3  ;;  %1190 = vmatmul.f32.gmra.mxu0 %v4097_v31  ;;  %v4099_v31 = vld [vmem:[#allocation186_spill] sm:$0xff] }
 0x244   :  { %v1055_v6 = vpop.f32.mrf.mxu2  ;;  %v966_v15 = vpop.f32.mrf.mxu1 }
 0x245   :  { %v3442_v61 = vadd.f32 %v1055_v6, %v987_v18  ;;  %v3445_v25 = vadd.f32 %v3364_v37, %v966_v15 }
 0x247   :  { %1688 = vmatmul.msk.f32.gmra.mxu1 %vm873_vm5, %v3105_v13 }
 0x248   :  { %1125 = vmatmul.f32.gmra.mxu3 %v4098_v55  ;;  %v1146_v24 = vpop.f32.mrf.mxu0 }
 0x249   :  { %1326 = vmatmul.f32.gmra.mxu2 %v4013_v32 }
 0x24b   :  { %v1078_v19 = vpop.f32.mrf.mxu3  ;;  %1193 = vmatmul.f32.gmra.mxu0 %v4099_v31 }
 0x24c   :  { %v1058_v41 = vpop.f32.mrf.mxu2  ;;  %v1079_v18 = vadd.f32 %v1078_v19, %v1011_v23  ;;  %v1214_v15 = vpop.f32.mrf.mxu1 }
 0x24d   :  { %v3454_v6 = vadd.f32 %v1058_v41, %v990_v58 }
 0x24e   :  { %v1147_v37 = vadd.f32 %v1146_v24, %v1079_v18 }
 0x24f   :  { %1689 = vmatmul.msk.f32.gmra.mxu1 %vm873_vm5, %v3107_v47 }
 0x250   :  { %v1215_v13 = vadd.f32 %v1214_v15, %v1147_v37  ;;  %1349 = vmatmul.f32.vlgmr.msrb.gmra.mxu3 %v3924_v14  ;;  %v1149_v32 = vpop.f32.mrf.mxu0 }
 0x251   :  { %1329 = vmatmul.f32.gmra.mxu2 %v4029_v11 }
 0x252   :  { %1605 = vst [vmem:[#allocation4] sm:$0xff] %v1215_v13  ;;  %v1017_v13 = vadd.f32 %v3384_v7, %v3378_v10 }
 0x253   :  { %v1081_v16 = vpop.f32.mrf.mxu3  ;;  %1417 = vmatmul.f32.vlgmr.msra.gmra.mxu0 %v4046_v8 }
 0x254   :  { %v3462_v31 = vpop.f32.mrf.mxu2  ;;  %v1082_v19 = vadd.f32 %v1081_v16, %v1014_v54  ;;  %v1217_v41 = vpop.f32.mrf.mxu1 }
 0x256   :  { %v1150_v23 = vadd.f32 %v1149_v32, %v1082_v19 }
 0x257   :  { %1485 = vmatmul.f32.vlgmr.msrb.gmra.mxu1 %v2982_v63 }
 0x258   :  { %v1218_v58 = vadd.f32 %v1217_v41, %v1150_v23  ;;  %1352 = vmatmul.f32.gmra.mxu3 %v3939_v46  ;;  %v1152_v14 = vpop.f32.mrf.mxu0  ;;  %v1020_v46 = vadd.f32 %v3395_v56, %v3389_v0  ;;  %v1023_v0 = vadd.f32 %v3406_v20, %v3400_v39  ;;  %v1026_v39 = vadd.f32 %v3417_v35, %v3411_v43 }
 0x259   :  { %1690 = vmatmul.msk.f32.vlgmr.msrb.gmra.mxu2 %vm873_vm5, %v3072_v57  ;;  %v1029_v43 = vadd.f32 %v3428_v4, %v3422_v9  ;;  %v1032_v9 = vadd.f32 %v3439_v36, %v3433_v21 }
 0x25a   :  { %1608 = vst [vmem:[#allocation4 + $0x10] sm:$0xff] %v1218_v58 }
 0x25b   :  { %v1084_v60 = vpop.f32.mrf.mxu3  ;;  %1420 = vmatmul.f32.gmra.mxu0 %v4057_v28 }
 0x25c   :  { %v3471_v26 = vpop.f32.mrf.mxu2  ;;  %v1085_v11 = vadd.f32 %v1084_v60, %v1017_v13  ;;  %v1220_v8 = vpop.f32.mrf.mxu1  ;;  %v4100_v13 = vld [vmem:[#allocation147_spill] sm:$0xff] }
 0x25e   :  { %v1153_v24 = vadd.f32 %v1152_v14, %v1085_v11 }
 0x25f   :  { %1488 = vmatmul.f32.gmra.mxu1 %v2984_v49 }
 0x260   :  { %v1221_v63 = vadd.f32 %v1220_v8, %v1153_v24  ;;  %1355 = vmatmul.f32.gmra.mxu3 %v3955_v33  ;;  %v1155_v57 = vpop.f32.mrf.mxu0  ;;  %v4102_v8 = vld [vmem:[#allocation164_spill] sm:$0xff] }
 0x261   :  { %1691 = vmatmul.msk.f32.gmra.mxu2 %vm873_vm5, %v3074_v45 }
 0x262   :  { %1610 = vst [vmem:[#allocation4 + $0x20] sm:$0xff] %v1221_v63 }
 0x263   :  { %v1087_v10 = vpop.f32.mrf.mxu3  ;;  %1423 = vmatmul.f32.gmra.mxu0 %v4063_v52 }
 0x264   :  { %v3480_v7 = vpop.f32.mrf.mxu2  ;;  %v1088_v28 = vadd.f32 %v1087_v10, %v1020_v46  ;;  %v1223_v18 = vpop.f32.mrf.mxu1  ;;  %v4105_v46 = vld [vmem:[#allocation148_spill] sm:$0xff] }
 0x265   :  { %v4106_v10 = vld [vmem:[#allocation188_spill] sm:$0xff] }
 0x266   :  { %v1156_v15 = vadd.f32 %v1155_v57, %v1088_v28  ;;  %v4104_v57 = vld [vmem:[#allocation178_spill] sm:$0xff] }
 0x267   :  { %1491 = vmatmul.f32.gmra.mxu1 %v4065_v17 }
 0x268   :  { %v1224_v49 = vadd.f32 %v1223_v18, %v1156_v15  ;;  %1358 = vmatmul.f32.gmra.mxu3 %v3971_v34  ;;  %v1158_v45 = vpop.f32.mrf.mxu0 }
 0x269   :  { %1692 = vmatmul.msk.f32.gmra.mxu2 %vm873_vm5, %v3076_v29 }
 0x26a   :  { %1612 = vst [vmem:[#allocation4 + $0x30] sm:$0xff] %v1224_v49  ;;  %v4107_v49 = vld [vmem:[#allocation165_spill] sm:$0xff] }
 0x26b   :  { %v1090_v33 = vpop.f32.mrf.mxu3  ;;  %1426 = vmatmul.f32.gmra.mxu0 %v4067_v38 }
 0x26c   :  { %v3489_v56 = vpop.f32.mrf.mxu2  ;;  %v1091_v52 = vadd.f32 %v1090_v33, %v1023_v0  ;;  %v1226_v37 = vpop.f32.mrf.mxu1 }
 0x26e   :  { %v1159_v32 = vadd.f32 %v1158_v45, %v1091_v52  ;;  %v4108_v45 = vld [vmem:[#allocation26_spill] sm:$0xff] }
 0x26f   :  { %1494 = vmatmul.f32.gmra.mxu1 %v4068_v40 }
 0x270   :  { %v1227_v17 = vadd.f32 %v1226_v37, %v1159_v32  ;;  %1361 = vmatmul.f32.gmra.mxu3 %v3987_v59  ;;  %v1161_v29 = vpop.f32.mrf.mxu0  ;;  %v4109_v37 = vld [vmem:[#allocation179_spill] sm:$0xff] }
 0x271   :  { %1693 = vmatmul.msk.f32.gmra.mxu2 %vm873_vm5, %v3078_v27 }
 0x272   :  { %1614 = vst [vmem:[#allocation4 + $0x40] sm:$0xff] %v1227_v17  ;;  %v4110_v17 = vld [vmem:[#allocation149_spill] sm:$0xff] }
 0x273   :  { %v1093_v34 = vpop.f32.mrf.mxu3  ;;  %1429 = vmatmul.f32.gmra.mxu0 %v4069_v42 }
 0x274   :  { %v3498_v20 = vpop.f32.mrf.mxu2  ;;  %v1094_v38 = vadd.f32 %v1093_v34, %v1026_v39  ;;  %v1229_v54 = vpop.f32.mrf.mxu1 }
 0x276   :  { %v1162_v16 = vadd.f32 %v1161_v29, %v1094_v38  ;;  %v4111_v29 = vld [vmem:[#allocation189_spill] sm:$0xff] }
 0x277   :  { %1497 = vmatmul.f32.gmra.mxu1 %v2993_v3 }
 0x278   :  { %v1230_v40 = vadd.f32 %v1229_v54, %v1162_v16  ;;  %1364 = vmatmul.f32.gmra.mxu3 %v4003_v44  ;;  %v1164_v27 = vpop.f32.mrf.mxu0  ;;  %v4112_v54 = vld [vmem:[#allocation166_spill] sm:$0xff]  ;;  %v4113_v16 = vld [vmem:[#allocation131_spill] sm:$0xff] }
 0x279   :  { %1694 = vmatmul.msk.f32.gmra.mxu2 %vm873_vm5, %v3083_v53 }
 0x27a   :  { %1616 = vst [vmem:[#allocation4 + $0x50] sm:$0xff] %v1230_v40 }
 0x27b   :  { %v1096_v59 = vpop.f32.mrf.mxu3  ;;  %1432 = vmatmul.f32.gmra.mxu0 %v4070_v30 }
 0x27c   :  { %v3507_v35 = vpop.f32.mrf.mxu2  ;;  %v1097_v42 = vadd.f32 %v1096_v59, %v1029_v43  ;;  %v1232_v19 = vpop.f32.mrf.mxu1  ;;  %v4114_v59 = vld [vmem:[#allocation180_spill] sm:$0xff] }
 0x27e   :  { %v1165_v41 = vadd.f32 %v1164_v27, %v1097_v42 }
 0x27f   :  { %1500 = vmatmul.f32.gmra.mxu1 %v4071_v48 }
 0x280   :  { %v1233_v3 = vadd.f32 %v1232_v19, %v1165_v41  ;;  %1367 = vmatmul.f32.gmra.mxu3 %v4019_v22  ;;  %v1167_v53 = vpop.f32.mrf.mxu0  ;;  %v4115_v19 = vld [vmem:[#allocation150_spill] sm:$0xff] }
 0x281   :  { %1695 = vmatmul.msk.f32.gmra.mxu2 %vm873_vm5, %v3085_v1  ;;  %v4116_v41 = vld [vmem:[#allocation190_spill] sm:$0xff] }
 0x282   :  { %1618 = vst [vmem:[#allocation4 + $0x60] sm:$0xff] %v1233_v3 }
 0x283   :  { %v1099_v44 = vpop.f32.mrf.mxu3  ;;  %1435 = vmatmul.f32.gmra.mxu0 %v4072_v62 }
 0x284   :  { %v3516_v4 = vpop.f32.mrf.mxu2  ;;  %v1100_v30 = vadd.f32 %v1099_v44, %v1032_v9  ;;  %v1235_v23 = vpop.f32.mrf.mxu1  ;;  %v4117_v44 = vld [vmem:[#allocation167_spill] sm:$0xff] }
 0x286   :  { %v1168_v58 = vadd.f32 %v1167_v53, %v1100_v30  ;;  %v4118_v30 = vld [vmem:[#allocation25_spill] sm:$0xff] }
 0x287   :  { %1503 = vmatmul.f32.gmra.mxu1 %v4073_v50 }
 0x288   :  { %v1236_v48 = vadd.f32 %v1235_v23, %v1168_v58  ;;  %1370 = vmatmul.f32.gmra.mxu3 %v4035_v12  ;;  %v1170_v1 = vpop.f32.mrf.mxu0  ;;  %v4101_v12 = vld [vmem:[#allocation187_spill] sm:$0xff] }
 0x289   :  { %1696 = vmatmul.msk.f32.gmra.mxu2 %vm873_vm5, %v3087_v5 }
 0x28a   :  { %1620 = vst [vmem:[#allocation4 + $0x70] sm:$0xff] %v1236_v48 }
 0x28b   :  { %v1102_v21 = vpop.f32.mrf.mxu3  ;;  %1438 = vmatmul.f32.gmra.mxu0 %v4074_v2  ;;  %v4103_v2 = vld [vmem:[#allocation9_spill] sm:$0xff] }
 0x28c   :  { %v3523_v22 = vpop.f32.mrf.mxu2  ;;  %v1103_v62 = vadd.f32 %v1102_v21, %v3445_v25  ;;  %v1238_v36 = vpop.f32.mrf.mxu1 }
 0x28e   :  { %v1171_v14 = vadd.f32 %v1170_v1, %v1103_v62  ;;  %v4119_v1 = vld [vmem:[#allocation181_spill] sm:$0xff]  ;;  %v4120_v62 = vld [vmem:[#allocation151_spill] sm:$0xff] }
 0x28f   :  { %1506 = vmatmul.f32.gmra.mxu1 %v4075_v51 }
 0x290   :  { %v1239_v50 = vadd.f32 %v1238_v36, %v1171_v14  ;;  %1373 = vmatmul.f32.gmra.mxu3 %v4100_v13  ;;  %v1173_v5 = vpop.f32.mrf.mxu0  ;;  %v4121_v36 = vld [vmem:[#allocation191_spill] sm:$0xff] }
 0x291   :  { %1697 = vmatmul.msk.f32.gmra.mxu2 %vm873_vm5, %v4101_v12  ;;  %v4122_v12 = vld [vmem:[#allocation168_spill] sm:$0xff] }
 0x292   :  { %1622 = vst [vmem:[#allocation4 + $0x80] sm:$0xff] %v1239_v50 }
 0x293   :  { %v1105_v60 = vpop.f32.mrf.mxu3  ;;  %1441 = vmatmul.f32.gmra.mxu0 %v4102_v8 }
 0x294   :  { %v3531_v11 = vpop.f32.mrf.mxu2  ;;  %v1106_v24 = vadd.f32 %v1105_v60, %v4103_v2  ;;  %v1241_v25 = vpop.f32.mrf.mxu1 }
 0x296   :  { %v1174_v63 = vadd.f32 %v1173_v5, %v1106_v24  ;;  %v4123_v5 = vld [vmem:[#allocation73_spill] sm:$0xff]  ;;  %v4124_v24 = vld [vmem:[#allocation182_spill] sm:$0xff] }
 0x297   :  { %1509 = vmatmul.f32.gmra.mxu1 %v4104_v57  ;;  %v4126_v57 = vld [vmem:[#allocation192_spill] sm:$0xff] }
 0x298   :  { %v1242_v51 = vadd.f32 %v1241_v25, %v1174_v63  ;;  %1376 = vmatmul.f32.gmra.mxu3 %v4105_v46  ;;  %v1176_v28 = vpop.f32.mrf.mxu0  ;;  %v4125_v63 = vld [vmem:[#allocation152_spill] sm:$0xff] }
 0x299   :  { %1698 = vmatmul.msk.f32.gmra.mxu2 %vm873_vm5, %v4106_v10 }
 0x29a   :  { %1624 = vst [vmem:[#allocation4 + $0x90] sm:$0xff] %v1242_v51 }
 0x29b   :  { %v1108_v18 = vpop.f32.mrf.mxu3  ;;  %1444 = vmatmul.f32.gmra.mxu0 %v4107_v49 }
 0x29c   :  { %v3539_v15 = vpop.f32.mrf.mxu2  ;;  %v1109_v0 = vadd.f32 %v1108_v18, %v4108_v45  ;;  %v1244_v33 = vpop.f32.mrf.mxu1  ;;  %v4128_v18 = vld [vmem:[#allocation121_spill] sm:$0xff] }
 0x29e   :  { %v1177_v52 = vadd.f32 %v1176_v28, %v1109_v0  ;;  %v4127_v28 = vld [vmem:[#allocation169_spill] sm:$0xff] }
 0x29f   :  { %1512 = vmatmul.f32.gmra.mxu1 %v4109_v37  ;;  %v4130_v37 = vld [vmem:[#allocation153_spill] sm:$0xff] }
 0x2a0   :  { %v1245_v32 = vadd.f32 %v1244_v33, %v1177_v52  ;;  %1379 = vmatmul.f32.gmra.mxu3 %v4110_v17  ;;  %v1179_v39 = vpop.f32.mrf.mxu0  ;;  %v4129_v33 = vld [vmem:[#allocation183_spill] sm:$0xff] }
 0x2a1   :  { %1699 = vmatmul.msk.f32.gmra.mxu2 %vm873_vm5, %v4111_v29 }
 0x2a2   :  { %1626 = vst [vmem:[#allocation4 + $0xa0] sm:$0xff] %v1245_v32  ;;  %v4131_v32 = vld [vmem:[#allocation193_spill] sm:$0xff] }
 0x2a3   :  { %v1111_v34 = vpop.f32.mrf.mxu3  ;;  %1447 = vmatmul.f32.gmra.mxu0 %v4112_v54 }
 0x2a4   :  { %v3547_v38 = vpop.f32.mrf.mxu2  ;;  %v1112_v40 = vadd.f32 %v1111_v34, %v4113_v16  ;;  %v1247_v27 = vpop.f32.mrf.mxu1  ;;  %v4132_v34 = vld [vmem:[#allocation170_spill] sm:$0xff] }
 0x2a6   :  { %v1180_v43 = vadd.f32 %v1179_v39, %v1112_v40 }
 0x2a7   :  { %1515 = vmatmul.f32.gmra.mxu1 %v4114_v59  ;;  %v4134_v59 = vld [vmem:[#allocation154_spill] sm:$0xff] }
 0x2a8   :  { %v1248_v42 = vadd.f32 %v1247_v27, %v1180_v43  ;;  %1382 = vmatmul.f32.gmra.mxu3 %v4115_v19  ;;  %v1182_v3 = vpop.f32.mrf.mxu0  ;;  %v4133_v27 = vld [vmem:[#allocation184_spill] sm:$0xff] }
 0x2a9   :  { %1700 = vmatmul.msk.f32.gmra.mxu2 %vm873_vm5, %v4116_v41 }
 0x2aa   :  { %1628 = vst [vmem:[#allocation4 + $0xb0] sm:$0xff] %v1248_v42  ;;  %v4135_v42 = vld [vmem:[#allocation194_spill] sm:$0xff] }
 0x2ab   :  { %v1114_v53 = vpop.f32.mrf.mxu3  ;;  %1450 = vmatmul.f32.gmra.mxu0 %v4117_v44 }
 0x2ac   :  { %v3555_v9 = vpop.f32.mrf.mxu2  ;;  %v1115_v23 = vadd.f32 %v1114_v53, %v4118_v30  ;;  %v1250_v58 = vpop.f32.mrf.mxu1  ;;  %v4136_v53 = vld [vmem:[#allocation171_spill] sm:$0xff] }
 0x2ae   :  { %v1183_v48 = vadd.f32 %v1182_v3, %v1115_v23  ;;  %v4137_v23 = vld [vmem:[#allocation185_spill] sm:$0xff] }
 0x2af   :  { %1518 = vmatmul.f32.gmra.mxu1 %v4119_v1  ;;  %v4139_v1 = vld [vmem:[#allocation195_spill] sm:$0xff] }
 0x2b0   :  { %v1251_v21 = vadd.f32 %v1250_v58, %v1183_v48  ;;  %1385 = vmatmul.f32.gmra.mxu3 %v4120_v62  ;;  %v1185_v14 = vpop.f32.mrf.mxu0  ;;  %v4138_v48 = vld [vmem:[#allocation155_spill] sm:$0xff] }
 0x2b1   :  { %1701 = vmatmul.msk.f32.gmra.mxu2 %vm873_vm5, %v4121_v36 }
 0x2b2   :  { %1630 = vst [vmem:[#allocation4 + $0xc0] sm:$0xff] %v1251_v21 }
 0x2b3   :  { %v1117_v50 = vpop.f32.mrf.mxu3  ;;  %1453 = vmatmul.f32.gmra.mxu0 %v4122_v12  ;;  %v4140_v12 = vld [vmem:[#allocation186_spill] sm:$0xff] }
 0x2b4   :  { %v3563_v13 = vpop.f32.mrf.mxu2  ;;  %v1118_v60 = vadd.f32 %v1117_v50, %v4123_v5  ;;  %v1253_v8 = vpop.f32.mrf.mxu1 }
 0x2b6   :  { %v1186_v2 = vadd.f32 %v1185_v14, %v1118_v60 }
 0x2b7   :  { %1521 = vmatmul.f32.gmra.mxu1 %v4124_v24 }
 0x2b8   :  { %v1254_v25 = vadd.f32 %v1253_v8, %v1186_v2  ;;  %1388 = vmatmul.f32.gmra.mxu3 %v4125_v63  ;;  %v1188_v51 = vpop.f32.mrf.mxu0 }
 0x2b9   :  { %1702 = vmatmul.msk.f32.gmra.mxu2 %vm873_vm5, %v4126_v57 }
 0x2ba   :  { %1632 = vst [vmem:[#allocation4 + $0xd0] sm:$0xff] %v1254_v25 }
 0x2bb   :  { %v1120_v46 = vpop.f32.mrf.mxu3  ;;  %1456 = vmatmul.f32.gmra.mxu0 %v4127_v28 }
 0x2bc   :  { %v3571_v10 = vpop.f32.mrf.mxu2  ;;  %v1121_v49 = vadd.f32 %v1120_v46, %v4128_v18  ;;  %v1256_v45 = vpop.f32.mrf.mxu1 }
 0x2be   :  { %v1189_v0 = vadd.f32 %v1188_v51, %v1121_v49 }
 0x2bf   :  { %1524 = vmatmul.f32.gmra.mxu1 %v4129_v33 }
 0x2c0   :  { %v1257_v52 = vadd.f32 %v1256_v45, %v1189_v0  ;;  %1391 = vmatmul.f32.gmra.mxu3 %v4130_v37  ;;  %v1191_v17 = vpop.f32.mrf.mxu0 }
 0x2c1   :  { %1703 = vmatmul.msk.f32.gmra.mxu2 %vm873_vm5, %v4131_v32 }
 0x2c2   :  { %1634 = vst [vmem:[#allocation4 + $0xe0] sm:$0xff] %v1257_v52 }
 0x2c3   :  { %v1123_v29 = vpop.f32.mrf.mxu3  ;;  %1459 = vmatmul.f32.gmra.mxu0 %v4132_v34 }
 0x2c4   :  { %v3579_v39 = vpop.f32.mrf.mxu2  ;;  %v1124_v54 = vadd.f32 %v1123_v29, %v3442_v61  ;;  %v1259_v16 = vpop.f32.mrf.mxu1 }
 0x2c6   :  { %v1192_v40 = vadd.f32 %v1191_v17, %v1124_v54 }
 0x2c7   :  { %1527 = vmatmul.f32.gmra.mxu1 %v4133_v27 }
 0x2c8   :  { %v1260_v43 = vadd.f32 %v1259_v16, %v1192_v40  ;;  %1394 = vmatmul.f32.gmra.mxu3 %v4134_v59  ;;  %v1194_v19 = vpop.f32.mrf.mxu0 }
 0x2c9   :  { %1704 = vmatmul.msk.f32.gmra.mxu2 %vm873_vm5, %v4135_v42 }
 0x2ca   :  { %1636 = vst [vmem:[#allocation4 + $0xf0] sm:$0xff] %v1260_v43 }
 0x2cb   :  { %v1126_v41 = vpop.f32.mrf.mxu3  ;;  %1462 = vmatmul.f32.gmra.mxu0 %v4136_v53 }
 0x2cc   :  { %v3587_v3 = vpop.f32.mrf.mxu2  ;;  %v1127_v44 = vadd.f32 %v1126_v41, %v3454_v6  ;;  %v1262_v61 = vpop.f32.mrf.mxu1 }
 0x2ce   :  { %v1195_v30 = vadd.f32 %v1194_v19, %v1127_v44 }
 0x2cf   :  { %1530 = vmatmul.f32.gmra.mxu1 %v4137_v23 }
 0x2d0   :  { %v1263_v58 = vadd.f32 %v1262_v61, %v1195_v30  ;;  %1397 = vmatmul.f32.gmra.mxu3 %v4138_v48  ;;  %v1418_v21 = vpop.f32.mrf.mxu0 }
 0x2d1   :  { %1705 = vmatmul.msk.f32.gmra.mxu2 %vm873_vm5, %v4139_v1 }
 0x2d2   :  { %1638 = vst [vmem:[#allocation4 + $0x100] sm:$0xff] %v1263_v58 }
 0x2d3   :  { %v1350_v36 = vpop.f32.mrf.mxu3  ;;  %1465 = vmatmul.f32.gmra.mxu0 %v4098_v55 }
 0x2d4   :  { %v3595_v62 = vpop.f32.mrf.mxu2  ;;  %v1351_v14 = vadd.f32 %v1350_v36, %v3462_v31  ;;  %v1486_v6 = vpop.f32.mrf.mxu1 }
 0x2d6   :  { %v1419_v50 = vadd.f32 %v1418_v21, %v1351_v14 }
 0x2d7   :  { %1533 = vmatmul.f32.gmra.mxu1 %v4140_v12 }
 0x2d8   :  { %v1421_v5 = vpop.f32.mrf.mxu0  ;;  %v1487_v60 = vadd.f32 %v1486_v6, %v1419_v50 }
 0x2d9   :  { %1706 = vmatmul.msk.f32.gmra.mxu2 %vm873_vm5, %v3107_v47 }
 0x2db   :  { %v1353_v8 = vpop.f32.mrf.mxu3 }
 0x2dc   :  { %v1554_v2 = vpop.f32.mrf.mxu2  ;;  %v1354_v24 = vadd.f32 %v1353_v8, %v3471_v26  ;;  %v1489_v63 = vpop.f32.mrf.mxu1 }
 0x2dd   :  { %v1555_v25 = vadd.f32 %v1554_v2, %v1487_v60 }
 0x2de   :  { %v1422_v55 = vadd.f32 %v1421_v5, %v1354_v24 }
 0x2df   :  { %1607 = vst.msk [vmem:[#allocation4 + $0x8] sm:$0xff] %vm1606_vm6, %v1555_v25 }
 0x2e0   :  { %v1424_v31 = vpop.f32.mrf.mxu0  ;;  %v1490_v57 = vadd.f32 %v1489_v63, %v1422_v55 }
 0x2e3   :  { %v1356_v51 = vpop.f32.mrf.mxu3 }
 0x2e4   :  { %v1557_v46 = vpop.f32.mrf.mxu2  ;;  %v1357_v28 = vadd.f32 %v1356_v51, %v3480_v7  ;;  %v1492_v47 = vpop.f32.mrf.mxu1 }
 0x2e5   :  { %v1558_v18 = vadd.f32 %v1557_v46, %v1490_v57 }
 0x2e6   :  { %v1425_v49 = vadd.f32 %v1424_v31, %v1357_v28 }
 0x2e7   :  { %1609 = vst.msk [vmem:[#allocation4 + $0x18] sm:$0xff] %vm1606_vm6, %v1558_v18 }
 0x2e8   :  { %v1427_v45 = vpop.f32.mrf.mxu0  ;;  %v1493_v0 = vadd.f32 %v1492_v47, %v1425_v49 }
 0x2eb   :  { %v1359_v33 = vpop.f32.mrf.mxu3 }
 0x2ec   :  { %v1560_v26 = vpop.f32.mrf.mxu2  ;;  %v1360_v52 = vadd.f32 %v1359_v33, %v3489_v56  ;;  %v1495_v32 = vpop.f32.mrf.mxu1 }
 0x2ed   :  { %v1561_v37 = vadd.f32 %v1560_v26, %v1493_v0 }
 0x2ee   :  { %v1428_v17 = vadd.f32 %v1427_v45, %v1360_v52 }
 0x2ef   :  { %1611 = vst.msk [vmem:[#allocation4 + $0x28] sm:$0xff] %vm1606_vm6, %v1561_v37 }
 0x2f0   :  { %v1430_v29 = vpop.f32.mrf.mxu0  ;;  %v1496_v34 = vadd.f32 %v1495_v32, %v1428_v17 }
 0x2f3   :  { %v1362_v54 = vpop.f32.mrf.mxu3 }
 0x2f4   :  { %v1563_v7 = vpop.f32.mrf.mxu2  ;;  %v1363_v16 = vadd.f32 %v1362_v54, %v3498_v20  ;;  %v1498_v27 = vpop.f32.mrf.mxu1 }
 0x2f5   :  { %v1564_v40 = vadd.f32 %v1563_v7, %v1496_v34 }
 0x2f6   :  { %v1431_v43 = vadd.f32 %v1430_v29, %v1363_v16 }
 0x2f7   :  { %1613 = vst.msk [vmem:[#allocation4 + $0x38] sm:$0xff] %vm1606_vm6, %v1564_v40 }
 0x2f8   :  { %v1433_v59 = vpop.f32.mrf.mxu0  ;;  %v1499_v42 = vadd.f32 %v1498_v27, %v1431_v43 }
 0x2fb   :  { %v1365_v19 = vpop.f32.mrf.mxu3 }
 0x2fc   :  { %v1566_v56 = vpop.f32.mrf.mxu2  ;;  %v1366_v41 = vadd.f32 %v1365_v19, %v3507_v35  ;;  %v1501_v44 = vpop.f32.mrf.mxu1 }
 0x2fd   :  { %v1567_v53 = vadd.f32 %v1566_v56, %v1499_v42 }
 0x2fe   :  { %v1434_v61 = vadd.f32 %v1433_v59, %v1366_v41 }
 0x2ff   :  { %1615 = vst.msk [vmem:[#allocation4 + $0x48] sm:$0xff] %vm1606_vm6, %v1567_v53 }
 0x300   :  { %v1436_v30 = vpop.f32.mrf.mxu0  ;;  %v1502_v23 = vadd.f32 %v1501_v44, %v1434_v61 }
 0x303   :  { %v1368_v58 = vpop.f32.mrf.mxu3 }
 0x304   :  { %v1569_v20 = vpop.f32.mrf.mxu2  ;;  %v1369_v48 = vadd.f32 %v1368_v58, %v3516_v4  ;;  %v1504_v21 = vpop.f32.mrf.mxu1 }
 0x305   :  { %v1570_v1 = vadd.f32 %v1569_v20, %v1502_v23 }
 0x306   :  { %v1437_v36 = vadd.f32 %v1436_v30, %v1369_v48 }
 0x307   :  { %1617 = vst.msk [vmem:[#allocation4 + $0x58] sm:$0xff] %vm1606_vm6, %v1570_v1 }
 0x308   :  { %v1439_v14 = vpop.f32.mrf.mxu0  ;;  %v1505_v6 = vadd.f32 %v1504_v21, %v1437_v36 }
 0x30b   :  { %v1371_v50 = vpop.f32.mrf.mxu3 }
 0x30c   :  { %v1572_v35 = vpop.f32.mrf.mxu2  ;;  %v1372_v12 = vadd.f32 %v1371_v50, %v3523_v22  ;;  %v1507_v60 = vpop.f32.mrf.mxu1 }
 0x30d   :  { %v1573_v5 = vadd.f32 %v1572_v35, %v1505_v6 }
 0x30e   :  { %v1440_v8 = vadd.f32 %v1439_v14, %v1372_v12 }
 0x30f   :  { %1619 = vst.msk [vmem:[#allocation4 + $0x68] sm:$0xff] %vm1606_vm6, %v1573_v5 }
 0x310   :  { %v1442_v2 = vpop.f32.mrf.mxu0  ;;  %v1508_v24 = vadd.f32 %v1507_v60, %v1440_v8 }
 0x313   :  { %v1374_v25 = vpop.f32.mrf.mxu3 }
 0x314   :  { %v1575_v4 = vpop.f32.mrf.mxu2  ;;  %v1375_v63 = vadd.f32 %v1374_v25, %v3531_v11  ;;  %v1510_v31 = vpop.f32.mrf.mxu1 }
 0x315   :  { %v1576_v55 = vadd.f32 %v1575_v4, %v1508_v24 }
 0x316   :  { %v1443_v57 = vadd.f32 %v1442_v2, %v1375_v63 }
 0x317   :  { %1621 = vst.msk [vmem:[#allocation4 + $0x78] sm:$0xff] %vm1606_vm6, %v1576_v55 }
 0x318   :  { %v1445_v51 = vpop.f32.mrf.mxu0  ;;  %v1511_v46 = vadd.f32 %v1510_v31, %v1443_v57 }
 0x31b   :  { %v1377_v28 = vpop.f32.mrf.mxu3 }
 0x31c   :  { %v1578_v22 = vpop.f32.mrf.mxu2  ;;  %v1378_v18 = vadd.f32 %v1377_v28, %v3539_v15  ;;  %v1513_v49 = vpop.f32.mrf.mxu1 }
 0x31d   :  { %v1579_v47 = vadd.f32 %v1578_v22, %v1511_v46 }
 0x31e   :  { %v1446_v45 = vadd.f32 %v1445_v51, %v1378_v18 }
 0x31f   :  { %1623 = vst.msk [vmem:[#allocation4 + $0x88] sm:$0xff] %vm1606_vm6, %v1579_v47 }
 0x320   :  { %v1448_v0 = vpop.f32.mrf.mxu0  ;;  %v1514_v33 = vadd.f32 %v1513_v49, %v1446_v45 }
 0x323   :  { %v1380_v26 = vpop.f32.mrf.mxu3 }
 0x324   :  { %v1581_v11 = vpop.f32.mrf.mxu2  ;;  %v1381_v52 = vadd.f32 %v1380_v26, %v3547_v38  ;;  %v1516_v32 = vpop.f32.mrf.mxu1 }
 0x325   :  { %v1582_v37 = vadd.f32 %v1581_v11, %v1514_v33 }
 0x326   :  { %v1449_v17 = vadd.f32 %v1448_v0, %v1381_v52 }
 0x327   :  { %1625 = vst.msk [vmem:[#allocation4 + $0x98] sm:$0xff] %vm1606_vm6, %v1582_v37 }
 0x328   :  { %v1451_v29 = vpop.f32.mrf.mxu0  ;;  %v1517_v34 = vadd.f32 %v1516_v32, %v1449_v17 }
 0x32b   :  { %v1383_v54 = vpop.f32.mrf.mxu3 }
 0x32c   :  { %v1584_v15 = vpop.f32.mrf.mxu2  ;;  %v1384_v7 = vadd.f32 %v1383_v54, %v3555_v9  ;;  %v1519_v40 = vpop.f32.mrf.mxu1 }
 0x32d   :  { %v1585_v16 = vadd.f32 %v1584_v15, %v1517_v34 }
 0x32e   :  { %v1452_v27 = vadd.f32 %v1451_v29, %v1384_v7 }
 0x32f   :  { %1627 = vst.msk [vmem:[#allocation4 + $0xa8] sm:$0xff] %vm1606_vm6, %v1585_v16 }
 0x330   :  { %v1454_v43 = vpop.f32.mrf.mxu0  ;;  %v1520_v59 = vadd.f32 %v1519_v40, %v1452_v27 }
 0x333   :  { %v1386_v42 = vpop.f32.mrf.mxu3 }
 0x334   :  { %v1587_v38 = vpop.f32.mrf.mxu2  ;;  %v1387_v19 = vadd.f32 %v1386_v42, %v3563_v13  ;;  %v1522_v41 = vpop.f32.mrf.mxu1 }
 0x335   :  { %v1588_v56 = vadd.f32 %v1587_v38, %v1520_v59 }
 0x336   :  { %v1455_v53 = vadd.f32 %v1454_v43, %v1387_v19 }
 0x337   :  { %1629 = vst.msk [vmem:[#allocation4 + $0xb8] sm:$0xff] %vm1606_vm6, %v1588_v56 }
 0x338   :  { %v1457_v44 = vpop.f32.mrf.mxu0  ;;  %v1523_v61 = vadd.f32 %v1522_v41, %v1455_v53 }
 0x33b   :  { %v1389_v30 = vpop.f32.mrf.mxu3 }
 0x33c   :  { %v1590_v9 = vpop.f32.mrf.mxu2  ;;  %v1390_v23 = vadd.f32 %v1389_v30, %v3571_v10  ;;  %v1525_v20 = vpop.f32.mrf.mxu1 }
 0x33d   :  { %v1591_v58 = vadd.f32 %v1590_v9, %v1523_v61 }
 0x33e   :  { %v1458_v48 = vadd.f32 %v1457_v44, %v1390_v23 }
 0x33f   :  { %1631 = vst.msk [vmem:[#allocation4 + $0xc8] sm:$0xff] %vm1606_vm6, %v1591_v58 }
 0x340   :  { %v1460_v1 = vpop.f32.mrf.mxu0  ;;  %v1526_v21 = vadd.f32 %v1525_v20, %v1458_v48 }
 0x343   :  { %v1392_v36 = vpop.f32.mrf.mxu3 }
 0x344   :  { %v1593_v13 = vpop.f32.mrf.mxu2  ;;  %v1393_v14 = vadd.f32 %v1392_v36, %v3579_v39  ;;  %v1528_v50 = vpop.f32.mrf.mxu1 }
 0x345   :  { %v1594_v6 = vadd.f32 %v1593_v13, %v1526_v21 }
 0x346   :  { %v1461_v35 = vadd.f32 %v1460_v1, %v1393_v14 }
 0x347   :  { %1633 = vst.msk [vmem:[#allocation4 + $0xd8] sm:$0xff] %vm1606_vm6, %v1594_v6 }
 0x348   :  { %v1463_v12 = vpop.f32.mrf.mxu0  ;;  %v1529_v5 = vadd.f32 %v1528_v50, %v1461_v35 }
 0x34b   :  { %v1395_v60 = vpop.f32.mrf.mxu3 }
 0x34c   :  { %v1596_v10 = vpop.f32.mrf.mxu2  ;;  %v1396_v8 = vadd.f32 %v1395_v60, %v3587_v3  ;;  %v1531_v24 = vpop.f32.mrf.mxu1 }
 0x34d   :  { %v1597_v2 = vadd.f32 %v1596_v10, %v1529_v5 }
 0x34e   :  { %v1464_v25 = vadd.f32 %v1463_v12, %v1396_v8 }
 0x34f   :  { %1635 = vst.msk [vmem:[#allocation4 + $0xe8] sm:$0xff] %vm1606_vm6, %v1597_v2 }
 0x350   :  { %v1532_v4 = vadd.f32 %v1531_v24, %v1464_v25  ;;  %v1466_v63 = vpop.f32.mrf.mxu0 }
 0x353   :  { %v1398_v55 = vpop.f32.mrf.mxu3 }
 0x354   :  { %v1599_v39 = vpop.f32.mrf.mxu2  ;;  %v1399_v31 = vadd.f32 %v1398_v55, %v3595_v62  ;;  %v1534_v46 = vpop.f32.mrf.mxu1 }
 0x355   :  { %v1600_v57 = vadd.f32 %v1599_v39, %v1532_v4 }
 0x356   :  { %v1467_v51 = vadd.f32 %v1466_v63, %v1399_v31 }
 0x357   :  { %1637 = vst.msk [vmem:[#allocation4 + $0xf8] sm:$0xff] %vm1606_vm6, %v1600_v57 }
 0x358   :  { %v1535_v3 = vadd.f32 %v1534_v46, %v1467_v51 }
 0x35c   :  { %v1602_v28 = vpop.f32.mrf.mxu2 }
 0x35d   :  { %v1603_v22 = vadd.f32 %v1602_v28, %v1535_v3 }
 0x35f   :  { %1639 = vst.msk [vmem:[#allocation4 + $0x108] sm:$0xff] %vm1606_vm6, %v1603_v22 }
 0x360   :  { %1652 = dma.vmem_to_hbm [thread:$0]  %s1645_s10, 4352, %s1647_s12, [#allocation5], %s1792_s1, %s1792_s1, %s1793_s2  }
 0x361   :  { %1789 = dma.done.wait [#allocation5], 4352  }
 0x362   :  { %1790 = vsyncadd [#allocation5], 4294962944 }
 0x363   :  { %1657 = vsyncpa [#allocation5], 1 }
 0x364   :  { %1658 = vsyncmov [#allocation3] }
 0x367   :  { %s1659_s13 = vpop.sfrf %1658 }
 0x368   :  { %p1707_p0 = scmp.ne.s32.totalorder %s1659_s13, 0 }
 0x36a   :  { %1663 = shalt.err (%p1707_p0)  }

</bundles_post_ra>
